<compile_context>
chip_gen: v5e
topology: v5e:2x2
jax: 0.10.0
libtpu: 0.0.40
codegen_flags: <defaults>
</compile_context>

<pallas_src>
import functools

import jax
import jax.numpy as jnp
from jax.experimental import pallas as pl
from jax.experimental.pallas import tpu as pltpu

# ---- small hyperparams consistent with the module structure ----
VOCAB_SIZE = 65      # len(chars) in the original script (synthetic here)
BLOCK_SIZE = 16      # max context length
N_EMBD = 32
N_HEAD = 4           # head_size = N_EMBD // N_HEAD = 8
N_LAYER = 2
LN_EPS = 1e-5
VPAD = 128           # lm_head output padded to a full 128-lane tile


def _layernorm(x, w, b):
    mu = jnp.mean(x, axis=-1, keepdims=True)
    var = jnp.mean((x - mu) ** 2, axis=-1, keepdims=True)
    return (x - mu) * jax.lax.rsqrt(var + LN_EPS) * w + b


def _dot(a, b):
    return jnp.dot(a, b, preferred_element_type=jnp.float32)


def _dot_t(a, b):
    # a @ b.T without materializing a transpose (MXU handles transposed RHS).
    return jax.lax.dot_general(a, b, (((1,), (1,)), ((), ())),
                               preferred_element_type=jnp.float32)


# ---------------- fused whole-model Pallas kernel ----------------
def lm_forward_kernel(tok_ref, pos_ref, bias_ref,
                      ln1w_ref, ln1b_ref, wqkv_ref, wproj_ref, bproj_ref,
                      ln2w_ref, ln2b_ref, w1_ref, b1_ref, w2_ref, b2_ref,
                      lnfw_ref, lnfb_ref, wh_ref, bh_ref,
                      out_ref, *, n_head):
    x = tok_ref[...] + pos_ref[...]            # (BT, C) token + position embeddings
    bias = bias_ref[...]                       # (BT, BT) block-diag causal additive mask
    BT, C = x.shape
    hs = C // n_head
    n_layer = wqkv_ref.shape[0]

    for l in range(n_layer):                   # static unroll over layers
        # ---- multi-head causal self-attention on ln1(x) ----
        xn = _layernorm(x, ln1w_ref[l], ln1b_ref[l])
        qkv = _dot(xn, wqkv_ref[l])            # (BT, 3C); scale folded into Q weights
        wproj = wproj_ref[l]                   # (C, C)

        sa = jnp.zeros((BT, C), jnp.float32)
        for h in range(n_head):                # static unroll over heads
            qh = qkv[:, h * hs:(h + 1) * hs]
            kh = qkv[:, C + h * hs:C + (h + 1) * hs]
            vh = qkv[:, 2 * C + h * hs:2 * C + (h + 1) * hs]
            s = _dot_t(qh, kh) + bias          # (BT, BT), masked entries ~ -1e30
            s = s - jnp.max(s, axis=-1, keepdims=True)
            p = jnp.exp(s)
            p = p * pl.reciprocal(jnp.sum(p, axis=-1, keepdims=True), approx=True)
            oh = _dot(p, vh)                   # (BT, hs)
            # concat(heads) @ Wproj == sum_h  head_h @ Wproj[h*hs:(h+1)*hs, :]
            sa = sa + _dot(oh, wproj[h * hs:(h + 1) * hs, :])
        x = x + sa + bproj_ref[l]              # residual 1

        # ---- feed-forward on ln2(x) ----
        xn2 = _layernorm(x, ln2w_ref[l], ln2b_ref[l])
        h1 = jnp.maximum(_dot(xn2, w1_ref[l]) + b1_ref[l], 0.0)
        x = x + _dot(h1, w2_ref[l]) + b2_ref[l]  # residual 2

    # ---- final layernorm + lm_head (vocab padded to 128 lanes) ----
    xn = _layernorm(x, lnfw_ref[...], lnfb_ref[...])
    out_ref[...] = _dot(xn, wh_ref[...]) + bh_ref[...]


# ---------------- parameter init / prep ----------------
def init_params(key):
    def nrm(k, shape, scale=0.02):
        return jax.random.normal(k, shape, jnp.float32) * scale

    keys = jax.random.split(key, 4 + N_LAYER)
    params = {
        "tok": nrm(keys[0], (VOCAB_SIZE, N_EMBD), 1.0),
        "pos": nrm(keys[1], (BLOCK_SIZE, N_EMBD), 1.0),
        "lnf_w": jnp.ones((1, N_EMBD), jnp.float32),
        "lnf_b": jnp.zeros((1, N_EMBD), jnp.float32),
        "w_head": nrm(keys[2], (N_EMBD, VOCAB_SIZE)),
        "b_head": jnp.zeros((1, VOCAB_SIZE), jnp.float32),
        "layers": [],
    }
    for l in range(N_LAYER):
        ks = jax.random.split(keys[4 + l], 6)
        params["layers"].append({
            "ln1_w": jnp.ones((1, N_EMBD), jnp.float32),
            "ln1_b": jnp.zeros((1, N_EMBD), jnp.float32),
            # per-head key/query/value projections concatenated -> (C, C)
            "wq": nrm(ks[0], (N_EMBD, N_EMBD)),
            "wk": nrm(ks[1], (N_EMBD, N_EMBD)),
            "wv": nrm(ks[2], (N_EMBD, N_EMBD)),
            "wproj": nrm(ks[3], (N_EMBD, N_EMBD)),
            "bproj": jnp.zeros((1, N_EMBD), jnp.float32),
            "ln2_w": jnp.ones((1, N_EMBD), jnp.float32),
            "ln2_b": jnp.zeros((1, N_EMBD), jnp.float32),
            "w1": nrm(ks[4], (N_EMBD, 4 * N_EMBD)),
            "b1": jnp.zeros((1, 4 * N_EMBD), jnp.float32),
            "w2": nrm(ks[5], (4 * N_EMBD, N_EMBD)),
            "b2": jnp.zeros((1, N_EMBD), jnp.float32),
        })
    return params


def prep_weights(params):
    """Stack per-layer weights, fuse QKV (folding in the attention scale),
    and pad the lm_head to a lane-dense 128-wide output."""
    scale = N_EMBD ** -0.5                     # reference scales by n_embd**-0.5
    stk = lambda name: jnp.stack([lp[name] for lp in params["layers"]])
    wqkv = jnp.stack([
        jnp.concatenate([lp["wq"] * scale, lp["wk"], lp["wv"]], axis=1)
        for lp in params["layers"]])           # (L, C, 3C)
    w_head = jnp.zeros((N_EMBD, VPAD), jnp.float32).at[:, :VOCAB_SIZE].set(params["w_head"])
    b_head = jnp.zeros((1, VPAD), jnp.float32).at[:, :VOCAB_SIZE].set(params["b_head"])
    return dict(
        ln1_w=stk("ln1_w"), ln1_b=stk("ln1_b"),
        wqkv=wqkv, wproj=stk("wproj"), bproj=stk("bproj"),
        ln2_w=stk("ln2_w"), ln2_b=stk("ln2_b"),
        w1=stk("w1"), b1=stk("b1"), w2=stk("w2"), b2=stk("b2"),
        lnf_w=params["lnf_w"], lnf_b=params["lnf_b"],
        w_head=w_head, b_head=b_head)


# ---------------- wrapper ----------------
def language_model_forward(idx, params):
    """Pallas forward: logits (B, T, vocab). targets=None path (loss omitted)."""
    B, T = idx.shape
    C = N_EMBD
    w = prep_weights(params)

    # Embedding gather stays in plain JAX glue (data-dependent lookup).
    tok = params["tok"][idx].reshape(B * T, C)
    pos = jnp.tile(params["pos"][:T], (B, 1))          # (B*T, C)

    # Block-diagonal causal additive mask over the folded batch (static given B,T).
    r = jnp.arange(B * T)
    keep = (r[:, None] // T == r[None, :] // T) & (r[None, :] <= r[:, None])
    attn_bias = jnp.where(keep, 0.0, -1e30).astype(jnp.float32)

    args = (tok, pos, attn_bias,
            w["ln1_w"], w["ln1_b"], w["wqkv"], w["wproj"], w["bproj"],
            w["ln2_w"], w["ln2_b"], w["w1"], w["b1"], w["w2"], w["b2"],
            w["lnf_w"], w["lnf_b"], w["w_head"], w["b_head"])

    vmem = pl.BlockSpec(memory_space=pltpu.MemorySpace.VMEM)
    logits_pad = pl.pallas_call(
        functools.partial(lm_forward_kernel, n_head=N_HEAD),
        out_shape=jax.ShapeDtypeStruct((B * T, VPAD), jnp.float32),
        in_specs=[vmem] * len(args),
        out_specs=vmem,
    )(*args)

    return logits_pad.reshape(B, T, VPAD)[..., :VOCAB_SIZE]


# -------- pure-JAX reference for sanity check --------
def _ref_forward(idx, params):
    T = idx.shape[1]
    x = params["tok"][idx] + params["pos"][:T][None, :, :]
    scale = N_EMBD ** -0.5
    causal = jnp.tril(jnp.ones((T, T), bool))
    for lp in params["layers"]:
        xn = _layernorm(x, lp["ln1_w"][0], lp["ln1_b"][0])
        q, k, v = xn @ lp["wq"], xn @ lp["wk"], xn @ lp["wv"]
        hs = N_EMBD // N_HEAD
        outs = []
        for h in range(N_HEAD):
            sl = slice(h * hs, (h + 1) * hs)
            wei = jnp.einsum("btd,bsd->bts", q[..., sl], k[..., sl]) * scale
            wei = jnp.where(causal, wei, -jnp.inf)
            wei = jax.nn.softmax(wei, axis=-1)
            outs.append(jnp.einsum("bts,bsd->btd", wei, v[..., sl]))
        sa = jnp.concatenate(outs, -1) @ lp["wproj"] + lp["bproj"][0]
        x = x + sa
        xn2 = _layernorm(x, lp["ln2_w"][0], lp["ln2_b"][0])
        x = x + (jnp.maximum(xn2 @ lp["w1"] + lp["b1"][0], 0.0) @ lp["w2"] + lp["b2"][0])
    xn = _layernorm(x, params["lnf_w"][0], params["lnf_b"][0])
    return xn @ params["w_head"] + params["b_head"][0]


if __name__ == "__main__":
    key = jax.random.PRNGKey(0)
    pkey, ikey = jax.random.split(key)
    params = init_params(pkey)

    B, T = 2, 8
    idx = jax.random.randint(ikey, (B, T), 0, VOCAB_SIZE, dtype=jnp.int32)

    logits = language_model_forward(idx, params)
    logits = jax.block_until_ready(logits)

    ref = _ref_forward(idx, params)
    assert logits.shape == (B, T, VOCAB_SIZE)
    assert jnp.allclose(logits, ref, rtol=2e-3, atol=2e-3)

    # TODO(synk): cross-entropy loss path (targets != None) and generate() sampling
    # loop are host-side control flow, left out of the kernel.
    print("KERNEL_OK")
</pallas_src>

<mosaic_0001>
module attributes {stable_mosaic.version = 11 : i64} {
  func.func @lm_forward_kernel(%arg0: memref<16x32xf32, #tpu.memory_space<vmem>>, %arg1: memref<16x32xf32, #tpu.memory_space<vmem>>, %arg2: memref<16x16xf32, #tpu.memory_space<vmem>>, %arg3: memref<2x1x32xf32, #tpu.memory_space<vmem>>, %arg4: memref<2x1x32xf32, #tpu.memory_space<vmem>>, %arg5: memref<2x32x96xf32, #tpu.memory_space<vmem>>, %arg6: memref<2x32x32xf32, #tpu.memory_space<vmem>>, %arg7: memref<2x1x32xf32, #tpu.memory_space<vmem>>, %arg8: memref<2x1x32xf32, #tpu.memory_space<vmem>>, %arg9: memref<2x1x32xf32, #tpu.memory_space<vmem>>, %arg10: memref<2x32x128xf32, #tpu.memory_space<vmem>>, %arg11: memref<2x1x128xf32, #tpu.memory_space<vmem>>, %arg12: memref<2x128x32xf32, #tpu.memory_space<vmem>>, %arg13: memref<2x1x32xf32, #tpu.memory_space<vmem>>, %arg14: memref<1x32xf32, #tpu.memory_space<vmem>>, %arg15: memref<1x32xf32, #tpu.memory_space<vmem>>, %arg16: memref<32x128xf32, #tpu.memory_space<vmem>>, %arg17: memref<1x128xf32, #tpu.memory_space<vmem>>, %arg18: memref<16x128xf32, #tpu.memory_space<vmem>>) attributes {dimension_semantics = [], scalar_prefetch = 0 : i64, scratch_operands = 0 : i64, tpu.core_type = #tpu.core_type<tc>} {
    %c0 = arith.constant 0 : index
    %c0_0 = arith.constant 0 : index
    %0 = vector.load %arg0[%c0, %c0_0] : memref<16x32xf32, #tpu.memory_space<vmem>>, vector<16x32xf32>
    %c0_1 = arith.constant 0 : index
    %c0_2 = arith.constant 0 : index
    %1 = vector.load %arg1[%c0_1, %c0_2] : memref<16x32xf32, #tpu.memory_space<vmem>>, vector<16x32xf32>
    %2 = arith.addf %0, %1 : vector<16x32xf32>
    %c0_3 = arith.constant 0 : index
    %c0_4 = arith.constant 0 : index
    %3 = vector.load %arg2[%c0_3, %c0_4] : memref<16x16xf32, #tpu.memory_space<vmem>>, vector<16x16xf32>
    %c0_5 = arith.constant 0 : index
    %c0_6 = arith.constant 0 : index
    %c0_7 = arith.constant 0 : index
    %4 = vector.load %arg3[%c0_5, %c0_6, %c0_7] : memref<2x1x32xf32, #tpu.memory_space<vmem>>, vector<1x1x32xf32>
    %5 = vector.shape_cast %4 : vector<1x1x32xf32> to vector<1x32xf32>
    %c0_8 = arith.constant 0 : index
    %c0_9 = arith.constant 0 : index
    %c0_10 = arith.constant 0 : index
    %6 = vector.load %arg4[%c0_8, %c0_9, %c0_10] : memref<2x1x32xf32, #tpu.memory_space<vmem>>, vector<1x1x32xf32>
    %7 = vector.shape_cast %6 : vector<1x1x32xf32> to vector<1x32xf32>
    %cst = arith.constant dense<0.000000e+00> : vector<16xf32>
    %8 = vector.multi_reduction <add>, %2, %cst [1] : vector<16x32xf32> to vector<16xf32>
    %9 = vector.shape_cast %8 : vector<16xf32> to vector<16x1xf32>
    %cst_11 = arith.constant 3.200000e+01 : f32
    %10 = vector.broadcast %cst_11 : f32 to vector<16x1xf32>
    %11 = arith.divf %9, %10 : vector<16x1xf32>
    %12 = vector.broadcast %11 : vector<16x1xf32> to vector<16x32xf32>
    %13 = arith.subf %2, %12 : vector<16x32xf32>
    %14 = arith.mulf %13, %13 : vector<16x32xf32>
    %cst_12 = arith.constant dense<0.000000e+00> : vector<16xf32>
    %15 = vector.multi_reduction <add>, %14, %cst_12 [1] : vector<16x32xf32> to vector<16xf32>
    %16 = vector.shape_cast %15 : vector<16xf32> to vector<16x1xf32>
    %cst_13 = arith.constant 3.200000e+01 : f32
    %17 = vector.broadcast %cst_13 : f32 to vector<16x1xf32>
    %18 = arith.divf %16, %17 : vector<16x1xf32>
    %19 = vector.broadcast %11 : vector<16x1xf32> to vector<16x32xf32>
    %20 = arith.subf %2, %19 : vector<16x32xf32>
    %cst_14 = arith.constant 9.99999974E-6 : f32
    %21 = vector.broadcast %cst_14 : f32 to vector<16x1xf32>
    %22 = arith.addf %18, %21 : vector<16x1xf32>
    %23 = math.rsqrt %22 : vector<16x1xf32>
    %24 = vector.broadcast %23 : vector<16x1xf32> to vector<16x32xf32>
    %25 = arith.mulf %20, %24 : vector<16x32xf32>
    %26 = vector.broadcast %5 : vector<1x32xf32> to vector<16x32xf32>
    %27 = arith.mulf %25, %26 : vector<16x32xf32>
    %28 = vector.broadcast %7 : vector<1x32xf32> to vector<16x32xf32>
    %29 = arith.addf %27, %28 : vector<16x32xf32>
    %c0_15 = arith.constant 0 : index
    %c0_16 = arith.constant 0 : index
    %c0_17 = arith.constant 0 : index
    %30 = vector.load %arg5[%c0_15, %c0_16, %c0_17] : memref<2x32x96xf32, #tpu.memory_space<vmem>>, vector<1x32x96xf32>
    %31 = vector.shape_cast %30 : vector<1x32x96xf32> to vector<32x96xf32>
    %cst_18 = arith.constant dense<0.000000e+00> : vector<16x96xf32>
    %32 = tpu.matmul %29, %31, %cst_18 {dimension_numbers = #tpu.dot_dimension_numbers<[1], [0], [0], [1], [0, 0, 1, 1], [], []>} : vector<16x32xf32>, vector<32x96xf32>, vector<16x96xf32> -> vector<16x96xf32>
    %c0_19 = arith.constant 0 : index
    %c0_20 = arith.constant 0 : index
    %c0_21 = arith.constant 0 : index
    %33 = vector.load %arg6[%c0_19, %c0_20, %c0_21] : memref<2x32x32xf32, #tpu.memory_space<vmem>>, vector<1x32x32xf32>
    %34 = vector.shape_cast %33 : vector<1x32x32xf32> to vector<32x32xf32>
    %cst_22 = arith.constant 0.000000e+00 : f32
    %35 = vector.broadcast %cst_22 : f32 to vector<16x32xf32>
    %36 = vector.extract_strided_slice %32 {offsets = [0, 0], sizes = [16, 8], strides = [1, 1]} : vector<16x96xf32> to vector<16x8xf32>
    %37 = vector.extract_strided_slice %32 {offsets = [0, 32], sizes = [16, 8], strides = [1, 1]} : vector<16x96xf32> to vector<16x8xf32>
    %38 = vector.extract_strided_slice %32 {offsets = [0, 64], sizes = [16, 8], strides = [1, 1]} : vector<16x96xf32> to vector<16x8xf32>
    %cst_23 = arith.constant dense<0.000000e+00> : vector<16x16xf32>
    %39 = tpu.matmul %36, %37, %cst_23 {dimension_numbers = #tpu.dot_dimension_numbers<[1], [1], [0], [0], [0, 0, 1, 0], [], []>} : vector<16x8xf32>, vector<16x8xf32>, vector<16x16xf32> -> vector<16x16xf32>
    %40 = arith.addf %39, %3 : vector<16x16xf32>
    %cst_24 = arith.constant dense<0xFF800000> : vector<16xf32>
    %41 = vector.multi_reduction <maximumf>, %40, %cst_24 [1] : vector<16x16xf32> to vector<16xf32>
    %42 = vector.shape_cast %41 : vector<16xf32> to vector<16x1xf32>
    %43 = vector.broadcast %42 : vector<16x1xf32> to vector<16x16xf32>
    %44 = arith.subf %40, %43 : vector<16x16xf32>
    %45 = math.exp %44 : vector<16x16xf32>
    %cst_25 = arith.constant dense<0.000000e+00> : vector<16xf32>
    %46 = vector.multi_reduction <add>, %45, %cst_25 [1] : vector<16x16xf32> to vector<16xf32>
    %47 = vector.shape_cast %46 : vector<16xf32> to vector<16x1xf32>
    %48 = tpu.reciprocal %47 {approx = true} : vector<16x1xf32> -> vector<16x1xf32>
    %49 = vector.broadcast %48 : vector<16x1xf32> to vector<16x16xf32>
    %50 = arith.mulf %45, %49 : vector<16x16xf32>
    %cst_26 = arith.constant dense<0.000000e+00> : vector<16x8xf32>
    %51 = tpu.matmul %50, %38, %cst_26 {dimension_numbers = #tpu.dot_dimension_numbers<[1], [0], [0], [1], [0, 0, 1, 1], [], []>} : vector<16x16xf32>, vector<16x8xf32>, vector<16x8xf32> -> vector<16x8xf32>
    %52 = vector.extract_strided_slice %34 {offsets = [0, 0], sizes = [8, 32], strides = [1, 1]} : vector<32x32xf32> to vector<8x32xf32>
    %cst_27 = arith.constant dense<0.000000e+00> : vector<16x32xf32>
    %53 = tpu.matmul %51, %52, %cst_27 {dimension_numbers = #tpu.dot_dimension_numbers<[1], [0], [0], [1], [0, 0, 1, 1], [], []>} : vector<16x8xf32>, vector<8x32xf32>, vector<16x32xf32> -> vector<16x32xf32>
    %54 = arith.addf %35, %53 : vector<16x32xf32>
    %55 = vector.extract_strided_slice %32 {offsets = [0, 8], sizes = [16, 8], strides = [1, 1]} : vector<16x96xf32> to vector<16x8xf32>
    %56 = vector.extract_strided_slice %32 {offsets = [0, 40], sizes = [16, 8], strides = [1, 1]} : vector<16x96xf32> to vector<16x8xf32>
    %57 = vector.extract_strided_slice %32 {offsets = [0, 72], sizes = [16, 8], strides = [1, 1]} : vector<16x96xf32> to vector<16x8xf32>
    %cst_28 = arith.constant dense<0.000000e+00> : vector<16x16xf32>
    %58 = tpu.matmul %55, %56, %cst_28 {dimension_numbers = #tpu.dot_dimension_numbers<[1], [1], [0], [0], [0, 0, 1, 0], [], []>} : vector<16x8xf32>, vector<16x8xf32>, vector<16x16xf32> -> vector<16x16xf32>
    %59 = arith.addf %58, %3 : vector<16x16xf32>
    %cst_29 = arith.constant dense<0xFF800000> : vector<16xf32>
    %60 = vector.multi_reduction <maximumf>, %59, %cst_29 [1] : vector<16x16xf32> to vector<16xf32>
    %61 = vector.shape_cast %60 : vector<16xf32> to vector<16x1xf32>
    %62 = vector.broadcast %61 : vector<16x1xf32> to vector<16x16xf32>
    %63 = arith.subf %59, %62 : vector<16x16xf32>
    %64 = math.exp %63 : vector<16x16xf32>
    %cst_30 = arith.constant dense<0.000000e+00> : vector<16xf32>
    %65 = vector.multi_reduction <add>, %64, %cst_30 [1] : vector<16x16xf32> to vector<16xf32>
    %66 = vector.shape_cast %65 : vector<16xf32> to vector<16x1xf32>
    %67 = tpu.reciprocal %66 {approx = true} : vector<16x1xf32> -> vector<16x1xf32>
    %68 = vector.broadcast %67 : vector<16x1xf32> to vector<16x16xf32>
    %69 = arith.mulf %64, %68 : vector<16x16xf32>
    %cst_31 = arith.constant dense<0.000000e+00> : vector<16x8xf32>
    %70 = tpu.matmul %69, %57, %cst_31 {dimension_numbers = #tpu.dot_dimension_numbers<[1], [0], [0], [1], [0, 0, 1, 1], [], []>} : vector<16x16xf32>, vector<16x8xf32>, vector<16x8xf32> -> vector<16x8xf32>
    %71 = vector.extract_strided_slice %34 {offsets = [8, 0], sizes = [8, 32], strides = [1, 1]} : vector<32x32xf32> to vector<8x32xf32>
    %cst_32 = arith.constant dense<0.000000e+00> : vector<16x32xf32>
    %72 = tpu.matmul %70, %71, %cst_32 {dimension_numbers = #tpu.dot_dimension_numbers<[1], [0], [0], [1], [0, 0, 1, 1], [], []>} : vector<16x8xf32>, vector<8x32xf32>, vector<16x32xf32> -> vector<16x32xf32>
    %73 = arith.addf %54, %72 : vector<16x32xf32>
    %74 = vector.extract_strided_slice %32 {offsets = [0, 16], sizes = [16, 8], strides = [1, 1]} : vector<16x96xf32> to vector<16x8xf32>
    %75 = vector.extract_strided_slice %32 {offsets = [0, 48], sizes = [16, 8], strides = [1, 1]} : vector<16x96xf32> to vector<16x8xf32>
    %76 = vector.extract_strided_slice %32 {offsets = [0, 80], sizes = [16, 8], strides = [1, 1]} : vector<16x96xf32> to vector<16x8xf32>
    %cst_33 = arith.constant dense<0.000000e+00> : vector<16x16xf32>
    %77 = tpu.matmul %74, %75, %cst_33 {dimension_numbers = #tpu.dot_dimension_numbers<[1], [1], [0], [0], [0, 0, 1, 0], [], []>} : vector<16x8xf32>, vector<16x8xf32>, vector<16x16xf32> -> vector<16x16xf32>
    %78 = arith.addf %77, %3 : vector<16x16xf32>
    %cst_34 = arith.constant dense<0xFF800000> : vector<16xf32>
    %79 = vector.multi_reduction <maximumf>, %78, %cst_34 [1] : vector<16x16xf32> to vector<16xf32>
    %80 = vector.shape_cast %79 : vector<16xf32> to vector<16x1xf32>
    %81 = vector.broadcast %80 : vector<16x1xf32> to vector<16x16xf32>
    %82 = arith.subf %78, %81 : vector<16x16xf32>
    %83 = math.exp %82 : vector<16x16xf32>
    %cst_35 = arith.constant dense<0.000000e+00> : vector<16xf32>
    %84 = vector.multi_reduction <add>, %83, %cst_35 [1] : vector<16x16xf32> to vector<16xf32>
    %85 = vector.shape_cast %84 : vector<16xf32> to vector<16x1xf32>
    %86 = tpu.reciprocal %85 {approx = true} : vector<16x1xf32> -> vector<16x1xf32>
    %87 = vector.broadcast %86 : vector<16x1xf32> to vector<16x16xf32>
    %88 = arith.mulf %83, %87 : vector<16x16xf32>
    %cst_36 = arith.constant dense<0.000000e+00> : vector<16x8xf32>
    %89 = tpu.matmul %88, %76, %cst_36 {dimension_numbers = #tpu.dot_dimension_numbers<[1], [0], [0], [1], [0, 0, 1, 1], [], []>} : vector<16x16xf32>, vector<16x8xf32>, vector<16x8xf32> -> vector<16x8xf32>
    %90 = vector.extract_strided_slice %34 {offsets = [16, 0], sizes = [8, 32], strides = [1, 1]} : vector<32x32xf32> to vector<8x32xf32>
    %cst_37 = arith.constant dense<0.000000e+00> : vector<16x32xf32>
    %91 = tpu.matmul %89, %90, %cst_37 {dimension_numbers = #tpu.dot_dimension_numbers<[1], [0], [0], [1], [0, 0, 1, 1], [], []>} : vector<16x8xf32>, vector<8x32xf32>, vector<16x32xf32> -> vector<16x32xf32>
    %92 = arith.addf %73, %91 : vector<16x32xf32>
    %93 = vector.extract_strided_slice %32 {offsets = [0, 24], sizes = [16, 8], strides = [1, 1]} : vector<16x96xf32> to vector<16x8xf32>
    %94 = vector.extract_strided_slice %32 {offsets = [0, 56], sizes = [16, 8], strides = [1, 1]} : vector<16x96xf32> to vector<16x8xf32>
    %95 = vector.extract_strided_slice %32 {offsets = [0, 88], sizes = [16, 8], strides = [1, 1]} : vector<16x96xf32> to vector<16x8xf32>
    %cst_38 = arith.constant dense<0.000000e+00> : vector<16x16xf32>
    %96 = tpu.matmul %93, %94, %cst_38 {dimension_numbers = #tpu.dot_dimension_numbers<[1], [1], [0], [0], [0, 0, 1, 0], [], []>} : vector<16x8xf32>, vector<16x8xf32>, vector<16x16xf32> -> vector<16x16xf32>
    %97 = arith.addf %96, %3 : vector<16x16xf32>
    %cst_39 = arith.constant dense<0xFF800000> : vector<16xf32>
    %98 = vector.multi_reduction <maximumf>, %97, %cst_39 [1] : vector<16x16xf32> to vector<16xf32>
    %99 = vector.shape_cast %98 : vector<16xf32> to vector<16x1xf32>
    %100 = vector.broadcast %99 : vector<16x1xf32> to vector<16x16xf32>
    %101 = arith.subf %97, %100 : vector<16x16xf32>
    %102 = math.exp %101 : vector<16x16xf32>
    %cst_40 = arith.constant dense<0.000000e+00> : vector<16xf32>
    %103 = vector.multi_reduction <add>, %102, %cst_40 [1] : vector<16x16xf32> to vector<16xf32>
    %104 = vector.shape_cast %103 : vector<16xf32> to vector<16x1xf32>
    %105 = tpu.reciprocal %104 {approx = true} : vector<16x1xf32> -> vector<16x1xf32>
    %106 = vector.broadcast %105 : vector<16x1xf32> to vector<16x16xf32>
    %107 = arith.mulf %102, %106 : vector<16x16xf32>
    %cst_41 = arith.constant dense<0.000000e+00> : vector<16x8xf32>
    %108 = tpu.matmul %107, %95, %cst_41 {dimension_numbers = #tpu.dot_dimension_numbers<[1], [0], [0], [1], [0, 0, 1, 1], [], []>} : vector<16x16xf32>, vector<16x8xf32>, vector<16x8xf32> -> vector<16x8xf32>
    %109 = vector.extract_strided_slice %34 {offsets = [24, 0], sizes = [8, 32], strides = [1, 1]} : vector<32x32xf32> to vector<8x32xf32>
    %cst_42 = arith.constant dense<0.000000e+00> : vector<16x32xf32>
    %110 = tpu.matmul %108, %109, %cst_42 {dimension_numbers = #tpu.dot_dimension_numbers<[1], [0], [0], [1], [0, 0, 1, 1], [], []>} : vector<16x8xf32>, vector<8x32xf32>, vector<16x32xf32> -> vector<16x32xf32>
    %111 = arith.addf %92, %110 : vector<16x32xf32>
    %112 = arith.addf %2, %111 : vector<16x32xf32>
    %c0_43 = arith.constant 0 : index
    %c0_44 = arith.constant 0 : index
    %c0_45 = arith.constant 0 : index
    %113 = vector.load %arg7[%c0_43, %c0_44, %c0_45] : memref<2x1x32xf32, #tpu.memory_space<vmem>>, vector<1x1x32xf32>
    %114 = vector.shape_cast %113 : vector<1x1x32xf32> to vector<1x32xf32>
    %115 = vector.broadcast %114 : vector<1x32xf32> to vector<16x32xf32>
    %116 = arith.addf %112, %115 : vector<16x32xf32>
    %c0_46 = arith.constant 0 : index
    %c0_47 = arith.constant 0 : index
    %c0_48 = arith.constant 0 : index
    %117 = vector.load %arg8[%c0_46, %c0_47, %c0_48] : memref<2x1x32xf32, #tpu.memory_space<vmem>>, vector<1x1x32xf32>
    %118 = vector.shape_cast %117 : vector<1x1x32xf32> to vector<1x32xf32>
    %c0_49 = arith.constant 0 : index
    %c0_50 = arith.constant 0 : index
    %c0_51 = arith.constant 0 : index
    %119 = vector.load %arg9[%c0_49, %c0_50, %c0_51] : memref<2x1x32xf32, #tpu.memory_space<vmem>>, vector<1x1x32xf32>
    %120 = vector.shape_cast %119 : vector<1x1x32xf32> to vector<1x32xf32>
    %cst_52 = arith.constant dense<0.000000e+00> : vector<16xf32>
    %121 = vector.multi_reduction <add>, %116, %cst_52 [1] : vector<16x32xf32> to vector<16xf32>
    %122 = vector.shape_cast %121 : vector<16xf32> to vector<16x1xf32>
    %cst_53 = arith.constant 3.200000e+01 : f32
    %123 = vector.broadcast %cst_53 : f32 to vector<16x1xf32>
    %124 = arith.divf %122, %123 : vector<16x1xf32>
    %125 = vector.broadcast %124 : vector<16x1xf32> to vector<16x32xf32>
    %126 = arith.subf %116, %125 : vector<16x32xf32>
    %127 = arith.mulf %126, %126 : vector<16x32xf32>
    %cst_54 = arith.constant dense<0.000000e+00> : vector<16xf32>
    %128 = vector.multi_reduction <add>, %127, %cst_54 [1] : vector<16x32xf32> to vector<16xf32>
    %129 = vector.shape_cast %128 : vector<16xf32> to vector<16x1xf32>
    %cst_55 = arith.constant 3.200000e+01 : f32
    %130 = vector.broadcast %cst_55 : f32 to vector<16x1xf32>
    %131 = arith.divf %129, %130 : vector<16x1xf32>
    %132 = vector.broadcast %124 : vector<16x1xf32> to vector<16x32xf32>
    %133 = arith.subf %116, %132 : vector<16x32xf32>
    %cst_56 = arith.constant 9.99999974E-6 : f32
    %134 = vector.broadcast %cst_56 : f32 to vector<16x1xf32>
    %135 = arith.addf %131, %134 : vector<16x1xf32>
    %136 = math.rsqrt %135 : vector<16x1xf32>
    %137 = vector.broadcast %136 : vector<16x1xf32> to vector<16x32xf32>
    %138 = arith.mulf %133, %137 : vector<16x32xf32>
    %139 = vector.broadcast %118 : vector<1x32xf32> to vector<16x32xf32>
    %140 = arith.mulf %138, %139 : vector<16x32xf32>
    %141 = vector.broadcast %120 : vector<1x32xf32> to vector<16x32xf32>
    %142 = arith.addf %140, %141 : vector<16x32xf32>
    %c0_57 = arith.constant 0 : index
    %c0_58 = arith.constant 0 : index
    %c0_59 = arith.constant 0 : index
    %143 = vector.load %arg10[%c0_57, %c0_58, %c0_59] : memref<2x32x128xf32, #tpu.memory_space<vmem>>, vector<1x32x128xf32>
    %144 = vector.shape_cast %143 : vector<1x32x128xf32> to vector<32x128xf32>
    %cst_60 = arith.constant dense<0.000000e+00> : vector<16x128xf32>
    %145 = tpu.matmul %142, %144, %cst_60 {dimension_numbers = #tpu.dot_dimension_numbers<[1], [0], [0], [1], [0, 0, 1, 1], [], []>} : vector<16x32xf32>, vector<32x128xf32>, vector<16x128xf32> -> vector<16x128xf32>
    %c0_61 = arith.constant 0 : index
    %c0_62 = arith.constant 0 : index
    %c0_63 = arith.constant 0 : index
    %146 = vector.load %arg11[%c0_61, %c0_62, %c0_63] : memref<2x1x128xf32, #tpu.memory_space<vmem>>, vector<1x1x128xf32>
    %147 = vector.shape_cast %146 : vector<1x1x128xf32> to vector<1x128xf32>
    %148 = vector.broadcast %147 : vector<1x128xf32> to vector<16x128xf32>
    %149 = arith.addf %145, %148 : vector<16x128xf32>
    %cst_64 = arith.constant 0.000000e+00 : f32
    %150 = vector.broadcast %cst_64 : f32 to vector<16x128xf32>
    %151 = arith.maximumf %149, %150 : vector<16x128xf32>
    %c0_65 = arith.constant 0 : index
    %c0_66 = arith.constant 0 : index
    %c0_67 = arith.constant 0 : index
    %152 = vector.load %arg12[%c0_65, %c0_66, %c0_67] : memref<2x128x32xf32, #tpu.memory_space<vmem>>, vector<1x128x32xf32>
    %153 = vector.shape_cast %152 : vector<1x128x32xf32> to vector<128x32xf32>
    %cst_68 = arith.constant dense<0.000000e+00> : vector<16x32xf32>
    %154 = tpu.matmul %151, %153, %cst_68 {dimension_numbers = #tpu.dot_dimension_numbers<[1], [0], [0], [1], [0, 0, 1, 1], [], []>} : vector<16x128xf32>, vector<128x32xf32>, vector<16x32xf32> -> vector<16x32xf32>
    %155 = arith.addf %116, %154 : vector<16x32xf32>
    %c0_69 = arith.constant 0 : index
    %c0_70 = arith.constant 0 : index
    %c0_71 = arith.constant 0 : index
    %156 = vector.load %arg13[%c0_69, %c0_70, %c0_71] : memref<2x1x32xf32, #tpu.memory_space<vmem>>, vector<1x1x32xf32>
    %157 = vector.shape_cast %156 : vector<1x1x32xf32> to vector<1x32xf32>
    %158 = vector.broadcast %157 : vector<1x32xf32> to vector<16x32xf32>
    %159 = arith.addf %155, %158 : vector<16x32xf32>
    %c1 = arith.constant 1 : index
    %c0_72 = arith.constant 0 : index
    %c0_73 = arith.constant 0 : index
    %160 = vector.load %arg3[%c1, %c0_72, %c0_73] : memref<2x1x32xf32, #tpu.memory_space<vmem>>, vector<1x1x32xf32>
    %161 = vector.shape_cast %160 : vector<1x1x32xf32> to vector<1x32xf32>
    %c1_74 = arith.constant 1 : index
    %c0_75 = arith.constant 0 : index
    %c0_76 = arith.constant 0 : index
    %162 = vector.load %arg4[%c1_74, %c0_75, %c0_76] : memref<2x1x32xf32, #tpu.memory_space<vmem>>, vector<1x1x32xf32>
    %163 = vector.shape_cast %162 : vector<1x1x32xf32> to vector<1x32xf32>
    %cst_77 = arith.constant dense<0.000000e+00> : vector<16xf32>
    %164 = vector.multi_reduction <add>, %159, %cst_77 [1] : vector<16x32xf32> to vector<16xf32>
    %165 = vector.shape_cast %164 : vector<16xf32> to vector<16x1xf32>
    %cst_78 = arith.constant 3.200000e+01 : f32
    %166 = vector.broadcast %cst_78 : f32 to vector<16x1xf32>
    %167 = arith.divf %165, %166 : vector<16x1xf32>
    %168 = vector.broadcast %167 : vector<16x1xf32> to vector<16x32xf32>
    %169 = arith.subf %159, %168 : vector<16x32xf32>
    %170 = arith.mulf %169, %169 : vector<16x32xf32>
    %cst_79 = arith.constant dense<0.000000e+00> : vector<16xf32>
    %171 = vector.multi_reduction <add>, %170, %cst_79 [1] : vector<16x32xf32> to vector<16xf32>
    %172 = vector.shape_cast %171 : vector<16xf32> to vector<16x1xf32>
    %cst_80 = arith.constant 3.200000e+01 : f32
    %173 = vector.broadcast %cst_80 : f32 to vector<16x1xf32>
    %174 = arith.divf %172, %173 : vector<16x1xf32>
    %175 = vector.broadcast %167 : vector<16x1xf32> to vector<16x32xf32>
    %176 = arith.subf %159, %175 : vector<16x32xf32>
    %cst_81 = arith.constant 9.99999974E-6 : f32
    %177 = vector.broadcast %cst_81 : f32 to vector<16x1xf32>
    %178 = arith.addf %174, %177 : vector<16x1xf32>
    %179 = math.rsqrt %178 : vector<16x1xf32>
    %180 = vector.broadcast %179 : vector<16x1xf32> to vector<16x32xf32>
    %181 = arith.mulf %176, %180 : vector<16x32xf32>
    %182 = vector.broadcast %161 : vector<1x32xf32> to vector<16x32xf32>
    %183 = arith.mulf %181, %182 : vector<16x32xf32>
    %184 = vector.broadcast %163 : vector<1x32xf32> to vector<16x32xf32>
    %185 = arith.addf %183, %184 : vector<16x32xf32>
    %c1_82 = arith.constant 1 : index
    %c0_83 = arith.constant 0 : index
    %c0_84 = arith.constant 0 : index
    %186 = vector.load %arg5[%c1_82, %c0_83, %c0_84] : memref<2x32x96xf32, #tpu.memory_space<vmem>>, vector<1x32x96xf32>
    %187 = vector.shape_cast %186 : vector<1x32x96xf32> to vector<32x96xf32>
    %cst_85 = arith.constant dense<0.000000e+00> : vector<16x96xf32>
    %188 = tpu.matmul %185, %187, %cst_85 {dimension_numbers = #tpu.dot_dimension_numbers<[1], [0], [0], [1], [0, 0, 1, 1], [], []>} : vector<16x32xf32>, vector<32x96xf32>, vector<16x96xf32> -> vector<16x96xf32>
    %c1_86 = arith.constant 1 : index
    %c0_87 = arith.constant 0 : index
    %c0_88 = arith.constant 0 : index
    %189 = vector.load %arg6[%c1_86, %c0_87, %c0_88] : memref<2x32x32xf32, #tpu.memory_space<vmem>>, vector<1x32x32xf32>
    %190 = vector.shape_cast %189 : vector<1x32x32xf32> to vector<32x32xf32>
    %cst_89 = arith.constant 0.000000e+00 : f32
    %191 = vector.broadcast %cst_89 : f32 to vector<16x32xf32>
    %192 = vector.extract_strided_slice %188 {offsets = [0, 0], sizes = [16, 8], strides = [1, 1]} : vector<16x96xf32> to vector<16x8xf32>
    %193 = vector.extract_strided_slice %188 {offsets = [0, 32], sizes = [16, 8], strides = [1, 1]} : vector<16x96xf32> to vector<16x8xf32>
    %194 = vector.extract_strided_slice %188 {offsets = [0, 64], sizes = [16, 8], strides = [1, 1]} : vector<16x96xf32> to vector<16x8xf32>
    %cst_90 = arith.constant dense<0.000000e+00> : vector<16x16xf32>
    %195 = tpu.matmul %192, %193, %cst_90 {dimension_numbers = #tpu.dot_dimension_numbers<[1], [1], [0], [0], [0, 0, 1, 0], [], []>} : vector<16x8xf32>, vector<16x8xf32>, vector<16x16xf32> -> vector<16x16xf32>
    %196 = arith.addf %195, %3 : vector<16x16xf32>
    %cst_91 = arith.constant dense<0xFF800000> : vector<16xf32>
    %197 = vector.multi_reduction <maximumf>, %196, %cst_91 [1] : vector<16x16xf32> to vector<16xf32>
    %198 = vector.shape_cast %197 : vector<16xf32> to vector<16x1xf32>
    %199 = vector.broadcast %198 : vector<16x1xf32> to vector<16x16xf32>
    %200 = arith.subf %196, %199 : vector<16x16xf32>
    %201 = math.exp %200 : vector<16x16xf32>
    %cst_92 = arith.constant dense<0.000000e+00> : vector<16xf32>
    %202 = vector.multi_reduction <add>, %201, %cst_92 [1] : vector<16x16xf32> to vector<16xf32>
    %203 = vector.shape_cast %202 : vector<16xf32> to vector<16x1xf32>
    %204 = tpu.reciprocal %203 {approx = true} : vector<16x1xf32> -> vector<16x1xf32>
    %205 = vector.broadcast %204 : vector<16x1xf32> to vector<16x16xf32>
    %206 = arith.mulf %201, %205 : vector<16x16xf32>
    %cst_93 = arith.constant dense<0.000000e+00> : vector<16x8xf32>
    %207 = tpu.matmul %206, %194, %cst_93 {dimension_numbers = #tpu.dot_dimension_numbers<[1], [0], [0], [1], [0, 0, 1, 1], [], []>} : vector<16x16xf32>, vector<16x8xf32>, vector<16x8xf32> -> vector<16x8xf32>
    %208 = vector.extract_strided_slice %190 {offsets = [0, 0], sizes = [8, 32], strides = [1, 1]} : vector<32x32xf32> to vector<8x32xf32>
    %cst_94 = arith.constant dense<0.000000e+00> : vector<16x32xf32>
    %209 = tpu.matmul %207, %208, %cst_94 {dimension_numbers = #tpu.dot_dimension_numbers<[1], [0], [0], [1], [0, 0, 1, 1], [], []>} : vector<16x8xf32>, vector<8x32xf32>, vector<16x32xf32> -> vector<16x32xf32>
    %210 = arith.addf %191, %209 : vector<16x32xf32>
    %211 = vector.extract_strided_slice %188 {offsets = [0, 8], sizes = [16, 8], strides = [1, 1]} : vector<16x96xf32> to vector<16x8xf32>
    %212 = vector.extract_strided_slice %188 {offsets = [0, 40], sizes = [16, 8], strides = [1, 1]} : vector<16x96xf32> to vector<16x8xf32>
    %213 = vector.extract_strided_slice %188 {offsets = [0, 72], sizes = [16, 8], strides = [1, 1]} : vector<16x96xf32> to vector<16x8xf32>
    %cst_95 = arith.constant dense<0.000000e+00> : vector<16x16xf32>
    %214 = tpu.matmul %211, %212, %cst_95 {dimension_numbers = #tpu.dot_dimension_numbers<[1], [1], [0], [0], [0, 0, 1, 0], [], []>} : vector<16x8xf32>, vector<16x8xf32>, vector<16x16xf32> -> vector<16x16xf32>
    %215 = arith.addf %214, %3 : vector<16x16xf32>
    %cst_96 = arith.constant dense<0xFF800000> : vector<16xf32>
    %216 = vector.multi_reduction <maximumf>, %215, %cst_96 [1] : vector<16x16xf32> to vector<16xf32>
    %217 = vector.shape_cast %216 : vector<16xf32> to vector<16x1xf32>
    %218 = vector.broadcast %217 : vector<16x1xf32> to vector<16x16xf32>
    %219 = arith.subf %215, %218 : vector<16x16xf32>
    %220 = math.exp %219 : vector<16x16xf32>
    %cst_97 = arith.constant dense<0.000000e+00> : vector<16xf32>
    %221 = vector.multi_reduction <add>, %220, %cst_97 [1] : vector<16x16xf32> to vector<16xf32>
    %222 = vector.shape_cast %221 : vector<16xf32> to vector<16x1xf32>
    %223 = tpu.reciprocal %222 {approx = true} : vector<16x1xf32> -> vector<16x1xf32>
    %224 = vector.broadcast %223 : vector<16x1xf32> to vector<16x16xf32>
    %225 = arith.mulf %220, %224 : vector<16x16xf32>
    %cst_98 = arith.constant dense<0.000000e+00> : vector<16x8xf32>
    %226 = tpu.matmul %225, %213, %cst_98 {dimension_numbers = #tpu.dot_dimension_numbers<[1], [0], [0], [1], [0, 0, 1, 1], [], []>} : vector<16x16xf32>, vector<16x8xf32>, vector<16x8xf32> -> vector<16x8xf32>
    %227 = vector.extract_strided_slice %190 {offsets = [8, 0], sizes = [8, 32], strides = [1, 1]} : vector<32x32xf32> to vector<8x32xf32>
    %cst_99 = arith.constant dense<0.000000e+00> : vector<16x32xf32>
    %228 = tpu.matmul %226, %227, %cst_99 {dimension_numbers = #tpu.dot_dimension_numbers<[1], [0], [0], [1], [0, 0, 1, 1], [], []>} : vector<16x8xf32>, vector<8x32xf32>, vector<16x32xf32> -> vector<16x32xf32>
    %229 = arith.addf %210, %228 : vector<16x32xf32>
    %230 = vector.extract_strided_slice %188 {offsets = [0, 16], sizes = [16, 8], strides = [1, 1]} : vector<16x96xf32> to vector<16x8xf32>
    %231 = vector.extract_strided_slice %188 {offsets = [0, 48], sizes = [16, 8], strides = [1, 1]} : vector<16x96xf32> to vector<16x8xf32>
    %232 = vector.extract_strided_slice %188 {offsets = [0, 80], sizes = [16, 8], strides = [1, 1]} : vector<16x96xf32> to vector<16x8xf32>
    %cst_100 = arith.constant dense<0.000000e+00> : vector<16x16xf32>
    %233 = tpu.matmul %230, %231, %cst_100 {dimension_numbers = #tpu.dot_dimension_numbers<[1], [1], [0], [0], [0, 0, 1, 0], [], []>} : vector<16x8xf32>, vector<16x8xf32>, vector<16x16xf32> -> vector<16x16xf32>
    %234 = arith.addf %233, %3 : vector<16x16xf32>
    %cst_101 = arith.constant dense<0xFF800000> : vector<16xf32>
    %235 = vector.multi_reduction <maximumf>, %234, %cst_101 [1] : vector<16x16xf32> to vector<16xf32>
    %236 = vector.shape_cast %235 : vector<16xf32> to vector<16x1xf32>
    %237 = vector.broadcast %236 : vector<16x1xf32> to vector<16x16xf32>
    %238 = arith.subf %234, %237 : vector<16x16xf32>
    %239 = math.exp %238 : vector<16x16xf32>
    %cst_102 = arith.constant dense<0.000000e+00> : vector<16xf32>
    %240 = vector.multi_reduction <add>, %239, %cst_102 [1] : vector<16x16xf32> to vector<16xf32>
    %241 = vector.shape_cast %240 : vector<16xf32> to vector<16x1xf32>
    %242 = tpu.reciprocal %241 {approx = true} : vector<16x1xf32> -> vector<16x1xf32>
    %243 = vector.broadcast %242 : vector<16x1xf32> to vector<16x16xf32>
    %244 = arith.mulf %239, %243 : vector<16x16xf32>
    %cst_103 = arith.constant dense<0.000000e+00> : vector<16x8xf32>
    %245 = tpu.matmul %244, %232, %cst_103 {dimension_numbers = #tpu.dot_dimension_numbers<[1], [0], [0], [1], [0, 0, 1, 1], [], []>} : vector<16x16xf32>, vector<16x8xf32>, vector<16x8xf32> -> vector<16x8xf32>
    %246 = vector.extract_strided_slice %190 {offsets = [16, 0], sizes = [8, 32], strides = [1, 1]} : vector<32x32xf32> to vector<8x32xf32>
    %cst_104 = arith.constant dense<0.000000e+00> : vector<16x32xf32>
    %247 = tpu.matmul %245, %246, %cst_104 {dimension_numbers = #tpu.dot_dimension_numbers<[1], [0], [0], [1], [0, 0, 1, 1], [], []>} : vector<16x8xf32>, vector<8x32xf32>, vector<16x32xf32> -> vector<16x32xf32>
    %248 = arith.addf %229, %247 : vector<16x32xf32>
    %249 = vector.extract_strided_slice %188 {offsets = [0, 24], sizes = [16, 8], strides = [1, 1]} : vector<16x96xf32> to vector<16x8xf32>
    %250 = vector.extract_strided_slice %188 {offsets = [0, 56], sizes = [16, 8], strides = [1, 1]} : vector<16x96xf32> to vector<16x8xf32>
    %251 = vector.extract_strided_slice %188 {offsets = [0, 88], sizes = [16, 8], strides = [1, 1]} : vector<16x96xf32> to vector<16x8xf32>
    %cst_105 = arith.constant dense<0.000000e+00> : vector<16x16xf32>
    %252 = tpu.matmul %249, %250, %cst_105 {dimension_numbers = #tpu.dot_dimension_numbers<[1], [1], [0], [0], [0, 0, 1, 0], [], []>} : vector<16x8xf32>, vector<16x8xf32>, vector<16x16xf32> -> vector<16x16xf32>
    %253 = arith.addf %252, %3 : vector<16x16xf32>
    %cst_106 = arith.constant dense<0xFF800000> : vector<16xf32>
    %254 = vector.multi_reduction <maximumf>, %253, %cst_106 [1] : vector<16x16xf32> to vector<16xf32>
    %255 = vector.shape_cast %254 : vector<16xf32> to vector<16x1xf32>
    %256 = vector.broadcast %255 : vector<16x1xf32> to vector<16x16xf32>
    %257 = arith.subf %253, %256 : vector<16x16xf32>
    %258 = math.exp %257 : vector<16x16xf32>
    %cst_107 = arith.constant dense<0.000000e+00> : vector<16xf32>
    %259 = vector.multi_reduction <add>, %258, %cst_107 [1] : vector<16x16xf32> to vector<16xf32>
    %260 = vector.shape_cast %259 : vector<16xf32> to vector<16x1xf32>
    %261 = tpu.reciprocal %260 {approx = true} : vector<16x1xf32> -> vector<16x1xf32>
    %262 = vector.broadcast %261 : vector<16x1xf32> to vector<16x16xf32>
    %263 = arith.mulf %258, %262 : vector<16x16xf32>
    %cst_108 = arith.constant dense<0.000000e+00> : vector<16x8xf32>
    %264 = tpu.matmul %263, %251, %cst_108 {dimension_numbers = #tpu.dot_dimension_numbers<[1], [0], [0], [1], [0, 0, 1, 1], [], []>} : vector<16x16xf32>, vector<16x8xf32>, vector<16x8xf32> -> vector<16x8xf32>
    %265 = vector.extract_strided_slice %190 {offsets = [24, 0], sizes = [8, 32], strides = [1, 1]} : vector<32x32xf32> to vector<8x32xf32>
    %cst_109 = arith.constant dense<0.000000e+00> : vector<16x32xf32>
    %266 = tpu.matmul %264, %265, %cst_109 {dimension_numbers = #tpu.dot_dimension_numbers<[1], [0], [0], [1], [0, 0, 1, 1], [], []>} : vector<16x8xf32>, vector<8x32xf32>, vector<16x32xf32> -> vector<16x32xf32>
    %267 = arith.addf %248, %266 : vector<16x32xf32>
    %268 = arith.addf %159, %267 : vector<16x32xf32>
    %c1_110 = arith.constant 1 : index
    %c0_111 = arith.constant 0 : index
    %c0_112 = arith.constant 0 : index
    %269 = vector.load %arg7[%c1_110, %c0_111, %c0_112] : memref<2x1x32xf32, #tpu.memory_space<vmem>>, vector<1x1x32xf32>
    %270 = vector.shape_cast %269 : vector<1x1x32xf32> to vector<1x32xf32>
    %271 = vector.broadcast %270 : vector<1x32xf32> to vector<16x32xf32>
    %272 = arith.addf %268, %271 : vector<16x32xf32>
    %c1_113 = arith.constant 1 : index
    %c0_114 = arith.constant 0 : index
    %c0_115 = arith.constant 0 : index
    %273 = vector.load %arg8[%c1_113, %c0_114, %c0_115] : memref<2x1x32xf32, #tpu.memory_space<vmem>>, vector<1x1x32xf32>
    %274 = vector.shape_cast %273 : vector<1x1x32xf32> to vector<1x32xf32>
    %c1_116 = arith.constant 1 : index
    %c0_117 = arith.constant 0 : index
    %c0_118 = arith.constant 0 : index
    %275 = vector.load %arg9[%c1_116, %c0_117, %c0_118] : memref<2x1x32xf32, #tpu.memory_space<vmem>>, vector<1x1x32xf32>
    %276 = vector.shape_cast %275 : vector<1x1x32xf32> to vector<1x32xf32>
    %cst_119 = arith.constant dense<0.000000e+00> : vector<16xf32>
    %277 = vector.multi_reduction <add>, %272, %cst_119 [1] : vector<16x32xf32> to vector<16xf32>
    %278 = vector.shape_cast %277 : vector<16xf32> to vector<16x1xf32>
    %cst_120 = arith.constant 3.200000e+01 : f32
    %279 = vector.broadcast %cst_120 : f32 to vector<16x1xf32>
    %280 = arith.divf %278, %279 : vector<16x1xf32>
    %281 = vector.broadcast %280 : vector<16x1xf32> to vector<16x32xf32>
    %282 = arith.subf %272, %281 : vector<16x32xf32>
    %283 = arith.mulf %282, %282 : vector<16x32xf32>
    %cst_121 = arith.constant dense<0.000000e+00> : vector<16xf32>
    %284 = vector.multi_reduction <add>, %283, %cst_121 [1] : vector<16x32xf32> to vector<16xf32>
    %285 = vector.shape_cast %284 : vector<16xf32> to vector<16x1xf32>
    %cst_122 = arith.constant 3.200000e+01 : f32
    %286 = vector.broadcast %cst_122 : f32 to vector<16x1xf32>
    %287 = arith.divf %285, %286 : vector<16x1xf32>
    %288 = vector.broadcast %280 : vector<16x1xf32> to vector<16x32xf32>
    %289 = arith.subf %272, %288 : vector<16x32xf32>
    %cst_123 = arith.constant 9.99999974E-6 : f32
    %290 = vector.broadcast %cst_123 : f32 to vector<16x1xf32>
    %291 = arith.addf %287, %290 : vector<16x1xf32>
    %292 = math.rsqrt %291 : vector<16x1xf32>
    %293 = vector.broadcast %292 : vector<16x1xf32> to vector<16x32xf32>
    %294 = arith.mulf %289, %293 : vector<16x32xf32>
    %295 = vector.broadcast %274 : vector<1x32xf32> to vector<16x32xf32>
    %296 = arith.mulf %294, %295 : vector<16x32xf32>
    %297 = vector.broadcast %276 : vector<1x32xf32> to vector<16x32xf32>
    %298 = arith.addf %296, %297 : vector<16x32xf32>
    %c1_124 = arith.constant 1 : index
    %c0_125 = arith.constant 0 : index
    %c0_126 = arith.constant 0 : index
    %299 = vector.load %arg10[%c1_124, %c0_125, %c0_126] : memref<2x32x128xf32, #tpu.memory_space<vmem>>, vector<1x32x128xf32>
    %300 = vector.shape_cast %299 : vector<1x32x128xf32> to vector<32x128xf32>
    %cst_127 = arith.constant dense<0.000000e+00> : vector<16x128xf32>
    %301 = tpu.matmul %298, %300, %cst_127 {dimension_numbers = #tpu.dot_dimension_numbers<[1], [0], [0], [1], [0, 0, 1, 1], [], []>} : vector<16x32xf32>, vector<32x128xf32>, vector<16x128xf32> -> vector<16x128xf32>
    %c1_128 = arith.constant 1 : index
    %c0_129 = arith.constant 0 : index
    %c0_130 = arith.constant 0 : index
    %302 = vector.load %arg11[%c1_128, %c0_129, %c0_130] : memref<2x1x128xf32, #tpu.memory_space<vmem>>, vector<1x1x128xf32>
    %303 = vector.shape_cast %302 : vector<1x1x128xf32> to vector<1x128xf32>
    %304 = vector.broadcast %303 : vector<1x128xf32> to vector<16x128xf32>
    %305 = arith.addf %301, %304 : vector<16x128xf32>
    %cst_131 = arith.constant 0.000000e+00 : f32
    %306 = vector.broadcast %cst_131 : f32 to vector<16x128xf32>
    %307 = arith.maximumf %305, %306 : vector<16x128xf32>
    %c1_132 = arith.constant 1 : index
    %c0_133 = arith.constant 0 : index
    %c0_134 = arith.constant 0 : index
    %308 = vector.load %arg12[%c1_132, %c0_133, %c0_134] : memref<2x128x32xf32, #tpu.memory_space<vmem>>, vector<1x128x32xf32>
    %309 = vector.shape_cast %308 : vector<1x128x32xf32> to vector<128x32xf32>
    %cst_135 = arith.constant dense<0.000000e+00> : vector<16x32xf32>
    %310 = tpu.matmul %307, %309, %cst_135 {dimension_numbers = #tpu.dot_dimension_numbers<[1], [0], [0], [1], [0, 0, 1, 1], [], []>} : vector<16x128xf32>, vector<128x32xf32>, vector<16x32xf32> -> vector<16x32xf32>
    %311 = arith.addf %272, %310 : vector<16x32xf32>
    %c1_136 = arith.constant 1 : index
    %c0_137 = arith.constant 0 : index
    %c0_138 = arith.constant 0 : index
    %312 = vector.load %arg13[%c1_136, %c0_137, %c0_138] : memref<2x1x32xf32, #tpu.memory_space<vmem>>, vector<1x1x32xf32>
    %313 = vector.shape_cast %312 : vector<1x1x32xf32> to vector<1x32xf32>
    %314 = vector.broadcast %313 : vector<1x32xf32> to vector<16x32xf32>
    %315 = arith.addf %311, %314 : vector<16x32xf32>
    %c0_139 = arith.constant 0 : index
    %c0_140 = arith.constant 0 : index
    %316 = vector.load %arg14[%c0_139, %c0_140] : memref<1x32xf32, #tpu.memory_space<vmem>>, vector<1x32xf32>
    %c0_141 = arith.constant 0 : index
    %c0_142 = arith.constant 0 : index
    %317 = vector.load %arg15[%c0_141, %c0_142] : memref<1x32xf32, #tpu.memory_space<vmem>>, vector<1x32xf32>
    %cst_143 = arith.constant dense<0.000000e+00> : vector<16xf32>
    %318 = vector.multi_reduction <add>, %315, %cst_143 [1] : vector<16x32xf32> to vector<16xf32>
    %319 = vector.shape_cast %318 : vector<16xf32> to vector<16x1xf32>
    %cst_144 = arith.constant 3.200000e+01 : f32
    %320 = vector.broadcast %cst_144 : f32 to vector<16x1xf32>
    %321 = arith.divf %319, %320 : vector<16x1xf32>
    %322 = vector.broadcast %321 : vector<16x1xf32> to vector<16x32xf32>
    %323 = arith.subf %315, %322 : vector<16x32xf32>
    %324 = arith.mulf %323, %323 : vector<16x32xf32>
    %cst_145 = arith.constant dense<0.000000e+00> : vector<16xf32>
    %325 = vector.multi_reduction <add>, %324, %cst_145 [1] : vector<16x32xf32> to vector<16xf32>
    %326 = vector.shape_cast %325 : vector<16xf32> to vector<16x1xf32>
    %cst_146 = arith.constant 3.200000e+01 : f32
    %327 = vector.broadcast %cst_146 : f32 to vector<16x1xf32>
    %328 = arith.divf %326, %327 : vector<16x1xf32>
    %329 = vector.broadcast %321 : vector<16x1xf32> to vector<16x32xf32>
    %330 = arith.subf %315, %329 : vector<16x32xf32>
    %cst_147 = arith.constant 9.99999974E-6 : f32
    %331 = vector.broadcast %cst_147 : f32 to vector<16x1xf32>
    %332 = arith.addf %328, %331 : vector<16x1xf32>
    %333 = math.rsqrt %332 : vector<16x1xf32>
    %334 = vector.broadcast %333 : vector<16x1xf32> to vector<16x32xf32>
    %335 = arith.mulf %330, %334 : vector<16x32xf32>
    %336 = vector.broadcast %316 : vector<1x32xf32> to vector<16x32xf32>
    %337 = arith.mulf %335, %336 : vector<16x32xf32>
    %338 = vector.broadcast %317 : vector<1x32xf32> to vector<16x32xf32>
    %339 = arith.addf %337, %338 : vector<16x32xf32>
    %c0_148 = arith.constant 0 : index
    %c0_149 = arith.constant 0 : index
    %340 = vector.load %arg16[%c0_148, %c0_149] : memref<32x128xf32, #tpu.memory_space<vmem>>, vector<32x128xf32>
    %cst_150 = arith.constant dense<0.000000e+00> : vector<16x128xf32>
    %341 = tpu.matmul %339, %340, %cst_150 {dimension_numbers = #tpu.dot_dimension_numbers<[1], [0], [0], [1], [0, 0, 1, 1], [], []>} : vector<16x32xf32>, vector<32x128xf32>, vector<16x128xf32> -> vector<16x128xf32>
    %c0_151 = arith.constant 0 : index
    %c0_152 = arith.constant 0 : index
    %342 = vector.load %arg17[%c0_151, %c0_152] : memref<1x128xf32, #tpu.memory_space<vmem>>, vector<1x128xf32>
    %343 = vector.broadcast %342 : vector<1x128xf32> to vector<16x128xf32>
    %344 = arith.addf %341, %343 : vector<16x128xf32>
    %c0_153 = arith.constant 0 : index
    %c0_154 = arith.constant 0 : index
    %345 = vector.load %arg18[%c0_153, %c0_154] : memref<16x128xf32, #tpu.memory_space<vmem>>, vector<16x128xf32>
    tpu.vector_store %arg18[%c0_153, %c0_154], %344 {strides = array<i32>} : memref<16x128xf32, #tpu.memory_space<vmem>>, vector<16x128xf32>,
    return
  }
}

</mosaic_0001>

<bundles_post_ra>
// kernel: tpu_custom_call.1
= control target key start
LH: loop header
LB: loop body
LE: loop exit
PB: predicated region body
PF: predicated region fallthrough
CT: control target
= control target key end

     0   :  { %s2659_s0 = inlined_call_operand.vmem [shape: f32[16,32], index: 0, kind: input, shape index: {}]   ;;  %s2660_s1 = inlined_call_operand.vmem [shape: f32[16,32], index: 1, kind: input, shape index: {}]   ;;  %s2661_s2 = inlined_call_operand.vmem [shape: f32[16,16], index: 2, kind: input, shape index: {}]   ;;  %s2662_s3 = inlined_call_operand.vmem [shape: f32[2,1,32], index: 3, kind: input, shape index: {}]   ;;  %s2663_s4 = inlined_call_operand.vmem [shape: f32[2,1,32], index: 4, kind: input, shape index: {}]   ;;  %s2664_s5 = inlined_call_operand.vmem [shape: f32[2,32,96], index: 5, kind: input, shape index: {}]   ;;  %s2665_s6 = inlined_call_operand.vmem [shape: f32[2,32,32], index: 6, kind: input, shape index: {}]   ;;  %s2666_s7 = inlined_call_operand.vmem [shape: f32[2,1,32], index: 7, kind: input, shape index: {}]   ;;  %s2667_s8 = inlined_call_operand.vmem [shape: f32[2,1,32], index: 8, kind: input, shape index: {}]   ;;  %s2668_s9 = inlined_call_operand.vmem [shape: f32[2,1,32], index: 9, kind: input, shape index: {}]   ;;  %s2669_s10 = inlined_call_operand.vmem [shape: f32[2,32,128], index: 10, kind: input, shape index: {}]   ;;  %s2670_s11 = inlined_call_operand.vmem [shape: f32[2,1,128], index: 11, kind: input, shape index: {}]   ;;  %s2671_s12 = inlined_call_operand.vmem [shape: f32[2,128,32], index: 12, kind: input, shape index: {}]   ;;  %s2672_s13 = inlined_call_operand.vmem [shape: f32[2,1,32], index: 13, kind: input, shape index: {}]   ;;  %s2673_s14 = inlined_call_operand.vmem [shape: f32[1,32], index: 14, kind: input, shape index: {}]   ;;  %s2674_s15 = inlined_call_operand.vmem [shape: f32[1,32], index: 15, kind: input, shape index: {}]   ;;  %s2675_s16 = inlined_call_operand.vmem [shape: f32[32,128], index: 16, kind: input, shape index: {}]   ;;  %s2676_s17 = inlined_call_operand.vmem [shape: f32[1,128], index: 17, kind: input, shape index: {}]   ;;  %s2677_s18 = inlined_call_operand.hbm [shape: f32[16,128], index: 18, kind: output, shape index: {}]  }
   0x1   :  { %2689 = sst [smem:[#allocation5_spill]] %s2659_s0 }
   0x2   :  { %2690 = sst [smem:[#allocation6_spill]] %s2660_s1 }
   0x3   :  { %2691 = sst [smem:[#allocation7_spill]] %s2661_s2 }
   0x4   :  { %2692 = sst [smem:[#allocation8_spill]] %s2672_s13 }
   0x5   :  { %s2693_s29 = sld [smem:[#allocation5_spill]]  ;;  %vm70_vm0 = vcmask 261120  }
   0x6   :  { %s2694_s13 = sld [smem:[#allocation6_spill]] }
   0xb   :  { %v60_v0 = vld [vmem:[%s2693_s29] sm:$0xff]  ;;  %v61_v2 = vld [vmem:[%s2693_s29 + $0x8] sm:$0xff] }
   0xc   :  { %v62_v1 = vld [vmem:[%s2694_s13] sm:$0xff]  ;;  %v63_v4 = vld [vmem:[%s2694_s13 + $0x8] sm:$0xff] }
   0xd   :  { %v2108_v3 = vadd.f32 %v62_v1, %v60_v0  ;;  %v2115_v6 = vadd.f32 %v63_v4, %v61_v2 }
   0xf   :  { %v71_v5 = vsel %vm70_vm0, %v2108_v3, 0.0 }
  0x10   :  { %72 = vadd.xlane.f32.xlu0 %v71_v5 }
  0x11   :  { %23 = vsyncpa [#allocation3], 0  ;;  %v74_v7 = vsel %vm70_vm0, %v2115_v6, 0.0  ;;  %v1989_v8 = vmov 32.0   ;;  %v135_v25 = vld [vmem:[%s2664_s5 + $0x18] sm:$0xff]  ;;  %v134_v26 = vld [vmem:[%s2664_s5 + $0x10] sm:$0xff] }
  0x12   :  { %1875 = vrcp.f32 %v1989_v8  ;;  %154 = vmatpush.msra.mxu0 %v135_v25  ;;  %v133_v27 = vld [vmem:[%s2664_s5 + $0x8] sm:$0xff]  ;;  %v132_v28 = vld [vmem:[%s2664_s5] sm:$0xff]  ;;  %s1990_s19 = smov 96   ;;  %vm175_vm8 = vcmask 64512   ;;  %s2695_s21 = sld [smem:[#allocation7_spill]]  ;;  %vm207_vm9 = vcmask 130048  }
  0x13   :  { %v1858_v43 = vld [vmem:[%s2662_s3] ss:$0 sm:$0xff]  ;;  %s1991_s2 = smov 64   ;;  %s1992_s23 = smov 88  }
  0x14   :  { %155 = vmatpush.msra.mxu0 %v134_v26  ;;  %v1859_v47 = vld [vmem:[%s2663_s4] ss:$0 sm:$0xff]  ;;  %s1993_s24 = smov 120   ;;  %s1994_s25 = smov 72  }
  0x15   :  { %s2685_s26 = smov 104   ;;  %s1996_s29 = smov 80  }
  0x16   :  { %156 = vmatpush.msra.mxu0 %v133_v27  ;;  %s2687_s30 = smov 112   ;;  %s2684_s0 = smov 56  }
  0x17   :  { %s2683_s1 = smov 48   ;;  %s2682_s20 = smov 40  }
  0x18   :  { %75 = vadd.xlane.f32.xlu0 %v74_v7  ;;  %v1876_v9 = vpop.eup %1875  ;;  %157 = vmatpush.msra.mxu0 %v132_v28  ;;  %v2168_v61 = vld [vmem:[%s2695_s21] sm:$0xff]  ;;  %v2175_v1 = vld [vmem:[%s2695_s21 + $0x8] sm:$0xff]  ;;  %s2696_s13 = sld [smem:[#allocation8_spill]]  ;;  %s2700_s28 = smov 48  }
  0x19   :  { %v78_v10 = vmul.f32 32.0, %v1876_v9  ;;  %vm82_vm1 = vweird.f32 %v1876_v9 }
  0x1b   :  { %v79_v11 = vsub.f32 1.0, %v78_v10 }
  0x1d   :  { %v80_v12 = vmul.f32 %v1876_v9, %v79_v11  ;;  %v165_v11 = vld [vmem:[%s2665_s6] sm:$0xff] }
  0x1f   :  { %v81_v13 = vadd.f32 %v1876_v9, %v80_v12 }
  0x21   :  { %v2119_v14 = vsel %vm82_vm1, %v1876_v9, %v81_v13 }
  0x83   :  { %v73_v15 = vpop.xlane.xlu0 %72 }
  0x84   :  { %v84_v16 = vmul.f32 %v2119_v14, %v73_v15 }
  0x86   :  { %v86_v17 = vsub.f32 %v2108_v3, %v84_v16 }
  0x88   :  { %v88_v18 = vmul.f32 %v86_v17, %v86_v17 }
  0x8a   :  { %v90_v19 = vsel %vm70_vm0, %v88_v18, 0.0 }
  0x8b   :  { %91 = vadd.xlane.f32.xlu1 %v90_v19  ;;  %v76_v20 = vpop.xlane.xlu0 %75 }
  0x8c   :  { %v85_v21 = vmul.f32 %v2119_v14, %v76_v20 }
  0x8e   :  { %v87_v22 = vsub.f32 %v2115_v6, %v85_v21 }
  0x90   :  { %v89_v23 = vmul.f32 %v87_v22, %v87_v22 }
  0x92   :  { %v93_v24 = vsel %vm70_vm0, %v89_v23, 0.0 }
  0x93   :  { %94 = vadd.xlane.f32.xlu1 %v93_v24 }
  0xfe   :  { %v92_v29 = vpop.xlane.xlu1 %91 }
  0xff   :  { %v96_v30 = vmul.f32 %v92_v29, %v2119_v14 }
 0x101   :  { %v98_v31 = vadd.f32 1e-05, %v96_v30 }
 0x103   :  { %1877 = vrsqrt.f32 %v98_v31  ;;  %vm106_vm3 = vweird.f32 %v98_v31 }
 0x106   :  { %v95_v32 = vpop.xlane.xlu1 %94 }
 0x107   :  { %v97_v33 = vmul.f32 %v95_v32, %v2119_v14 }
 0x109   :  { %v1878_v34 = vpop.eup %1877  ;;  %v99_v35 = vadd.f32 1e-05, %v97_v33 }
 0x10a   :  { %v101_v36 = vmul.f32 %v1878_v34, %v98_v31  ;;  %vm107_vm2 = vweird.f32 %v1878_v34 }
 0x10b   :  { %1879 = vrsqrt.f32 %v99_v35  ;;  %vm108_vm4 = vmor %vm106_vm3, %vm107_vm2  ;;  %vm116_vm6 = vweird.f32 %v99_v35 }
 0x10c   :  { %v102_v37 = vmul.f32 %v1878_v34, %v101_v36 }
 0x10e   :  { %v103_v38 = vmul.f32 0.5, %v102_v37 }
 0x110   :  { %v104_v39 = vsub.f32 1.5, %v103_v38 }
 0x111   :  { %v1880_v40 = vpop.eup %1879 }
 0x112   :  { %v105_v41 = vmul.f32 %v1878_v34, %v104_v39  ;;  %v111_v42 = vmul.f32 %v1880_v40, %v99_v35  ;;  %vm117_vm5 = vweird.f32 %v1880_v40 }
 0x113   :  { %vm118_vm7 = vmor %vm116_vm6, %vm117_vm5 }
 0x114   :  { %v109_v44 = vsel %vm108_vm4, %v1878_v34, %v105_v41  ;;  %v112_v45 = vmul.f32 %v1880_v40, %v111_v42 }
 0x115   :  { %v120_v46 = vmul.f32 %v109_v44, %v86_v17 }
 0x116   :  { %v113_v48 = vmul.f32 0.5, %v112_v45 }
 0x117   :  { %v125_v49 = vmul.f32 %v1858_v43, %v120_v46 }
 0x118   :  { %v114_v50 = vsub.f32 1.5, %v113_v48 }
 0x119   :  { %v130_v51 = vadd.f32 %v1859_v47, %v125_v49 }
 0x11a   :  { %v115_v52 = vmul.f32 %v1880_v40, %v114_v50 }
 0x11b   :  { %1692 = vmatmul.msk.f32.vlgmr.msra.gmra.mxu0 %vm70_vm0, %v130_v51 }
 0x11c   :  { %v119_v53 = vsel %vm118_vm7, %v1880_v40, %v115_v52 }
 0x11d   :  { %v121_v54 = vmul.f32 %v119_v53, %v87_v22 }
 0x11f   :  { %v126_v55 = vmul.f32 %v1858_v43, %v121_v54 }
 0x121   :  { %v131_v56 = vadd.f32 %v1859_v47, %v126_v55 }
 0x123   :  { %1693 = vmatmul.msk.f32.gmra.mxu0 %vm70_vm0, %v131_v56 }
 0x198   :  { %v2149_v57 = vpop.f32.mrf.mxu0 }
 0x1a0   :  { %v2151_v58 = vpop.f32.mrf.mxu0 }
 0x1a1   :  { %173 = vrot.lane.b32.xlu2 %v2151_v58, %s1990_s19  ;;  %v2181_v7 = vpack.i.bf16 %v2149_v57, %v2151_v58 }
 0x1a9   :  { %171 = vrot.lane.b32.xlu2 %v2149_v57, %s1990_s19 }
 0x1fb   :  { %v174_v59 = vpop.permute.xlu2 %173 }
 0x1fc   :  { %1694 = vmatpush.xpose.msk.msra.mxu1 %vm175_vm8, %v174_v59  ;;  %1801 = vmatpush.xpose.msk.msra.mxu2 %vm175_vm8, %v174_v59 }
 0x203   :  { %v172_v60 = vpop.permute.xlu2 %171 }
 0x204   :  { %1695 = vmatpush.xpose.msk.msra.mxu1 %vm175_vm8, %v172_v60  ;;  %1802 = vmatpush.xpose.msk.msra.mxu2 %vm175_vm8, %v172_v60 }
 0x207   :  { %1696 = vmatmul.msk.f32.vlgmr.msra.gmra.mxu1 %vm175_vm8, %v2149_v57  ;;  %1697 = vmatmul.msk.f32.vlgmr.msra.gmra.mxu2 %vm175_vm8, %v2151_v58 }
 0x208   :  { %411 = vmatpush.msrb.mxu1 %v165_v11 }
 0x284   :  { %v201_v62 = vpop.f32.mrf.mxu1 }
 0x285   :  { %v202_v63 = vadd.f32 %v201_v62, %v2168_v61 }
 0x287   :  { %v208_v0 = vsel %vm207_vm9, %v202_v63, -inf }
 0x288   :  { %209 = vmax.xlane.f32.xlu0 %v208_v0 }
 0x28a   :  { %v204_v2 = vpop.f32.mrf.mxu2 }
 0x28b   :  { %v205_v4 = vadd.f32 %v204_v2, %v2175_v1 }
 0x28d   :  { %v211_v5 = vsel %vm207_vm9, %v205_v4, -inf }
 0x28e   :  { %212 = vmax.xlane.f32.xlu1 %v211_v5 }
 0x29c   :  { %1819 = vrot.lane.b32.xlu0 %v2181_v7, %s1991_s2 }
 0x2a4   :  { %269 = vrot.lane.b32.xlu0 %v2149_v57, %s1992_s23 }
 0x2ac   :  { %265 = vrot.lane.b32.xlu0 %v2149_v57, %s1993_s24 }
 0x2b4   :  { %552 = vrot.lane.b32.xlu0 %v2151_v58, %s1994_s25 }
 0x2bc   :  { %550 = vrot.lane.b32.xlu0 %v2149_v57, %s1994_s25 }
 0x2c4   :  { %546 = vrot.lane.b32.xlu0 %v2149_v57, %s2685_s26 }
 0x2fb   :  { %v210_v8 = vpop.xlane.xlu0 %209 }
 0x2fc   :  { %v214_v9 = vsub.f32 %v202_v63, %v210_v8 }
 0x2fe   :  { %v216_v10 = vmul.f32 1.442695, %v214_v9 }
 0x300   :  { %1881 = vpow2.f32 %v216_v10 }
 0x301   :  { %v213_v12 = vpop.xlane.xlu1 %212 }
 0x302   :  { %v215_v13 = vsub.f32 %v205_v4, %v213_v12 }
 0x304   :  { %v218_v15 = vmul.f32 1.442695, %v215_v13 }
 0x306   :  { %v1882_v16 = vpop.eup %1881  ;;  %1883 = vpow2.f32 %v218_v15 }
 0x307   :  { %v220_v17 = vsel %vm207_vm9, %v1882_v16, 0.0 }
 0x308   :  { %221 = vadd.xlane.f32.xlu2 %v220_v17 }
 0x30c   :  { %v1884_v18 = vpop.eup %1883 }
 0x30d   :  { %v223_v19 = vsel %vm207_vm9, %v1884_v18, 0.0 }
 0x30e   :  { %224 = vadd.xlane.f32.xlu1 %v223_v19  ;;  %v1820_v20 = vpop.permute.xlu0 %1819 }
 0x30f   :  { %v1821_v21 = vunpack.i.l.bf16 %v1820_v20  ;;  %v1822_v22 = vunpack.i.h.bf16 %v1820_v20 }
 0x311   :  { %256 = vmatpush.msrb.mxu2 %v1821_v21 }
 0x313   :  { %257 = vmatpush.msrb.mxu2 %v1822_v22 }
 0x316   :  { %v270_v23 = vpop.permute.xlu0 %269 }
 0x31e   :  { %v266_v24 = vpop.permute.xlu0 %265 }
 0x320   :  { %425 = vrot.lane.b32.xlu2 %v2151_v58, %s1996_s29 }
 0x326   :  { %v553_v25 = vpop.permute.xlu0 %552 }
 0x327   :  { %271 = vrot.lane.b32.xlu1 %v2151_v58, %s1992_s23  ;;  %1718 = vmatpush.xpose.msk.msra.mxu1 %vm175_vm8, %v553_v25 }
 0x328   :  { %548 = vrot.lane.b32.xlu2 %v2151_v58, %s2685_s26  ;;  %s1680_s26 = sshll.u32 %s2677_s18, 4  ;;  %s1681_s26 = int_to_ptr.hbm [resolvable:$true] %s1680_s26 }
 0x32e   :  { %v551_v26 = vpop.permute.xlu0 %550 }
 0x32f   :  { %267 = vrot.lane.b32.xlu1 %v2151_v58, %s1993_s24  ;;  %1719 = vmatpush.xpose.msk.msra.mxu1 %vm175_vm8, %v551_v26 }
 0x336   :  { %v547_v41 = vpop.permute.xlu0 %546 }
 0x337   :  { %423 = vrot.lane.b32.xlu1 %v2149_v57, %s1996_s29 }
 0x33f   :  { %419 = vrot.lane.b32.xlu1 %v2149_v57, %s2687_s30 }
 0x347   :  { %421 = vrot.lane.b32.xlu1 %v2151_v58, %s2687_s30 }
 0x37b   :  { %v222_v27 = vpop.xlane.xlu2 %221 }
 0x37c   :  { %1885 = vrcp.f32 %v222_v27 }
 0x381   :  { %v225_v28 = vpop.xlane.xlu1 %224 }
 0x382   :  { %v1886_v29 = vpop.eup %1885  ;;  %1887 = vrcp.f32 %v225_v28 }
 0x383   :  { %v228_v30 = vmul.f32 %v1886_v29, %v1882_v16  ;;  %v426_v34 = vpop.permute.xlu2 %425 }
 0x385   :  { %1698 = vmatmul.msk.f32.vlgmr.msrb.gmra.mxu2 %vm207_vm9, %v228_v30 }
 0x388   :  { %v1888_v31 = vpop.eup %1887 }
 0x389   :  { %v229_v32 = vmul.f32 %v1888_v31, %v1884_v18 }
 0x38b   :  { %v549_v42 = vpop.permute.xlu2 %548 }
 0x38d   :  { %1699 = vmatmul.msk.f32.gmra.mxu2 %vm207_vm9, %v229_v32 }
 0x399   :  { %v272_v33 = vpop.permute.xlu1 %271 }
 0x39a   :  { %1700 = vmatpush.xpose.msk.msra.mxu3 %vm175_vm8, %v272_v33 }
 0x39e   :  { %1701 = vmatpush.xpose.msk.msra.mxu3 %vm175_vm8, %v270_v23 }
 0x3a1   :  { %v268_v35 = vpop.permute.xlu1 %267  ;;  %1702 = vmatmul.msk.f32.vlgmr.msra.gmra.mxu3 %vm175_vm8, %v266_v24 }
 0x3a2   :  { %1710 = vmatpush.xpose.msk.msrb.mxu3 %vm175_vm8, %v426_v34 }
 0x3a9   :  { %v424_v36 = vpop.permute.xlu1 %423  ;;  %1703 = vmatmul.msk.f32.gmra.mxu3 %vm175_vm8, %v268_v35 }
 0x3aa   :  { %1711 = vmatpush.xpose.msk.msrb.mxu3 %vm175_vm8, %v424_v36 }
 0x3b1   :  { %v420_v37 = vpop.permute.xlu1 %419 }
 0x3b2   :  { %1712 = vmatmul.msk.f32.vlgmr.msrb.gmra.mxu3 %vm175_vm8, %v420_v37 }
 0x3b9   :  { %v422_v38 = vpop.permute.xlu1 %421 }
 0x3ba   :  { %1713 = vmatmul.msk.f32.gmra.mxu3 %vm175_vm8, %v422_v38 }
 0x408   :  { %v259_v39 = vpop.f32.mrf.mxu2 }
 0x409   :  { %1708 = vmatmul.msk.f32.vlgmr.msrb.gmra.mxu1 %vm175_vm8, %v259_v39 }
 0x410   :  { %v262_v40 = vpop.f32.mrf.mxu2 }
 0x411   :  { %1709 = vmatmul.msk.f32.gmra.mxu1 %vm175_vm8, %v262_v40 }
 0x419   :  { %1720 = vmatmul.msk.f32.vlgmr.msra.gmra.mxu1 %vm175_vm8, %v547_v41 }
 0x421   :  { %1721 = vmatmul.msk.f32.gmra.mxu1 %vm175_vm8, %v549_v42 }
 0x424   :  { %v298_v43 = vpop.f32.mrf.mxu3 }
 0x425   :  { %v299_v44 = vadd.f32 %v298_v43, %v2168_v61 }
 0x427   :  { %v304_v45 = vsel %vm207_vm9, %v299_v44, -inf }
 0x428   :  { %305 = vmax.xlane.f32.xlu0 %v304_v45 }
 0x42c   :  { %v301_v46 = vpop.f32.mrf.mxu3 }
 0x42d   :  { %v302_v47 = vadd.f32 %v301_v46, %v2175_v1 }
 0x42f   :  { %v307_v48 = vsel %vm207_vm9, %v302_v47, -inf }
 0x430   :  { %308 = vmax.xlane.f32.xlu1 %v307_v48 }
 0x435   :  { %v452_v49 = vpop.f32.mrf.mxu3 }
 0x436   :  { %v453_v50 = vadd.f32 %v452_v49, %v2168_v61 }
 0x438   :  { %v458_v51 = vsel %vm207_vm9, %v453_v50, -inf }
 0x439   :  { %459 = vmax.xlane.f32.xlu0 %v458_v51 }
 0x43d   :  { %v455_v52 = vpop.f32.mrf.mxu3 }
 0x43e   :  { %v456_v53 = vadd.f32 %v455_v52, %v2175_v1 }
 0x440   :  { %v461_v54 = vsel %vm207_vm9, %v456_v53, -inf }
 0x441   :  { %462 = vmax.xlane.f32.xlu1 %v461_v54 }
 0x486   :  { %v2238_v55 = vpop.f32.mrf.mxu1 }
 0x48e   :  { %v2240_v56 = vpop.f32.mrf.mxu1 }
 0x496   :  { %v579_v57 = vpop.f32.mrf.mxu1 }
 0x497   :  { %v580_v58 = vadd.f32 %v579_v57, %v2168_v61 }
 0x499   :  { %v585_v59 = vsel %vm207_vm9, %v580_v58, -inf }
 0x49a   :  { %586 = vmax.xlane.f32.xlu2 %v585_v59 }
 0x49b   :  { %v306_v60 = vpop.xlane.xlu0 %305 }
 0x49c   :  { %v310_v62 = vsub.f32 %v299_v44, %v306_v60 }
 0x49e   :  { %v312_v63 = vmul.f32 1.442695, %v310_v62  ;;  %v582_v0 = vpop.f32.mrf.mxu1 }
 0x49f   :  { %v583_v2 = vadd.f32 %v582_v0, %v2175_v1 }
 0x4a0   :  { %1889 = vpow2.f32 %v312_v63 }
 0x4a1   :  { %v588_v4 = vsel %vm207_vm9, %v583_v2, -inf }
 0x4a2   :  { %589 = vmax.xlane.f32.xlu2 %v588_v4 }
 0x4a3   :  { %v309_v5 = vpop.xlane.xlu1 %308 }
 0x4a4   :  { %v311_v8 = vsub.f32 %v302_v47, %v309_v5 }
 0x4a6   :  { %v1890_v9 = vpop.eup %1889  ;;  %v314_v10 = vmul.f32 1.442695, %v311_v8 }
 0x4a7   :  { %v316_v11 = vsel %vm207_vm9, %v1890_v9, 0.0 }
 0x4a8   :  { %1891 = vpow2.f32 %v314_v10  ;;  %317 = vadd.xlane.f32.xlu0 %v316_v11 }
 0x4ac   :  { %v460_v12 = vpop.xlane.xlu0 %459 }
 0x4ad   :  { %v464_v13 = vsub.f32 %v453_v50, %v460_v12  ;;  %v166_v50 = vld [vmem:[%s2665_s6 + $0x8] sm:$0xff] }
 0x4ae   :  { %v1892_v15 = vpop.eup %1891  ;;  %382 = vmatpush.msrb.mxu0 %v166_v50 }
 0x4af   :  { %v466_v16 = vmul.f32 1.442695, %v464_v13  ;;  %v319_v17 = vsel %vm207_vm9, %v1892_v15, 0.0 }
 0x4b0   :  { %320 = vadd.xlane.f32.xlu1 %v319_v17 }
 0x4b1   :  { %1893 = vpow2.f32 %v466_v16 }
 0x4b4   :  { %v463_v23 = vpop.xlane.xlu1 %462 }
 0x4b5   :  { %v465_v27 = vsub.f32 %v456_v53, %v463_v23  ;;  %v167_v53 = vld [vmem:[%s2665_s6 + $0x10] sm:$0xff] }
 0x4b6   :  { %536 = vmatpush.msra.mxu0 %v167_v53 }
 0x4b7   :  { %v1894_v18 = vpop.eup %1893  ;;  %v468_v31 = vmul.f32 1.442695, %v465_v27 }
 0x4b8   :  { %v470_v19 = vsel %vm207_vm9, %v1894_v18, 0.0 }
 0x4b9   :  { %471 = vadd.xlane.f32.xlu1 %v470_v19 }
 0x4ba   :  { %1824 = vrot.lane.b32.xlu2 %v2181_v7, %s2684_s0  ;;  %s2002_s0 = smov 128  }
 0x4c2   :  { %1834 = vrot.lane.b32.xlu2 %v2181_v7, %s2683_s1  ;;  %s2701_s1 = smov 40  }
 0x50d   :  { %v587_v20 = vpop.xlane.xlu2 %586 }
 0x50e   :  { %v591_v21 = vsub.f32 %v580_v58, %v587_v20 }
 0x510   :  { %v593_v22 = vmul.f32 1.442695, %v591_v21  ;;  %v1860_v21 = vld [vmem:[%s2666_s7] ss:$0 sm:$0xff] }
 0x512   :  { %1895 = vpow2.f32 %v593_v22 }
 0x515   :  { %v590_v24 = vpop.xlane.xlu2 %589 }
 0x516   :  { %v592_v25 = vsub.f32 %v583_v2, %v590_v24 }
 0x518   :  { %v1896_v26 = vpop.eup %1895  ;;  %v595_v28 = vmul.f32 1.442695, %v592_v25 }
 0x519   :  { %v597_v29 = vsel %vm207_vm9, %v1896_v26, 0.0 }
 0x51a   :  { %1897 = vpow2.f32 %v595_v28  ;;  %598 = vadd.xlane.f32.xlu0 %v597_v29 }
 0x51b   :  { %v318_v30 = vpop.xlane.xlu0 %317 }
 0x51c   :  { %1899 = vrcp.f32 %v318_v30 }
 0x51d   :  { %v1825_v32 = vpop.permute.xlu2 %1824  ;;  %1901 = vpow2.f32 %v468_v31 }
 0x51e   :  { %v1826_v33 = vunpack.i.l.bf16 %v1825_v32  ;;  %v1827_v35 = vunpack.i.h.bf16 %v1825_v32 }
 0x520   :  { %v1898_v34 = vpop.eup %1897  ;;  %352 = vmatpush.msra.mxu2 %v1826_v33 }
 0x521   :  { %v600_v36 = vsel %vm207_vm9, %v1898_v34, 0.0 }
 0x522   :  { %v1900_v37 = vpop.eup %1899  ;;  %601 = vadd.xlane.f32.xlu1 %v600_v36  ;;  %353 = vmatpush.msra.mxu2 %v1827_v35 }
 0x523   :  { %v324_v38 = vmul.f32 %v1900_v37, %v1890_v9  ;;  %v321_v39 = vpop.xlane.xlu1 %320  ;;  %v1902_v41 = vpop.eup %1901  ;;  %v168_v9 = vld [vmem:[%s2665_s6 + $0x18] sm:$0xff] }
 0x524   :  { %1903 = vrcp.f32 %v321_v39  ;;  %v473_v44 = vsel %vm207_vm9, %v1902_v41, 0.0  ;;  %v740_v39 = vld [vmem:[%s2669_s10 + $0x18] sm:$0xff] }
 0x525   :  { %v1835_v40 = vpop.permute.xlu2 %1834  ;;  %1704 = vmatmul.msk.f32.vlgmr.msra.gmra.mxu2 %vm207_vm9, %v324_v38 }
 0x526   :  { %v1836_v42 = vunpack.i.l.bf16 %v1835_v40  ;;  %v1837_v43 = vunpack.i.h.bf16 %v1835_v40  ;;  %v739_v40 = vld [vmem:[%s2669_s10 + $0x10] sm:$0xff] }
 0x528   :  { %506 = vmatpush.msrb.mxu2 %v1836_v42  ;;  %v737_v42 = vld [vmem:[%s2669_s10] sm:$0xff] }
 0x52a   :  { %v1904_v45 = vpop.eup %1903  ;;  %474 = vadd.xlane.f32.xlu1 %v473_v44  ;;  %507 = vmatpush.msrb.mxu2 %v1837_v43 }
 0x52b   :  { %v325_v46 = vmul.f32 %v1904_v45, %v1892_v15 }
 0x52c   :  { %v472_v47 = vpop.xlane.xlu1 %471  ;;  %663 = vmatpush.msra.mxu2 %v168_v9  ;;  %v782_v9 = vld [vmem:[%s2671_s12 + $0x30] sm:$0xff] }
 0x52d   :  { %1905 = vrcp.f32 %v472_v47  ;;  %1705 = vmatmul.msk.f32.gmra.mxu2 %vm207_vm9, %v325_v46  ;;  %v791_v46 = vld [vmem:[%s2671_s12 + $0x78] sm:$0xff]  ;;  %v790_v47 = vld [vmem:[%s2671_s12 + $0x70] sm:$0xff] }
 0x52e   :  { %1829 = vrot.lane.b32.xlu0 %v2181_v7, %s2682_s20  ;;  %792 = vmatpush.msrb.mxu1 %v791_v46 }
 0x530   :  { %793 = vmatpush.msrb.mxu1 %v790_v47 }
 0x533   :  { %v1906_v48 = vpop.eup %1905 }
 0x534   :  { %v478_v49 = vmul.f32 %v1906_v48, %v1894_v18  ;;  %v789_v48 = vld [vmem:[%s2671_s12 + $0x68] sm:$0xff] }
 0x535   :  { %794 = vmatpush.msrb.mxu1 %v789_v48 }
 0x536   :  { %1714 = vmatmul.msk.f32.vlgmr.msrb.gmra.mxu2 %vm207_vm9, %v478_v49 }
 0x58d   :  { %v599_v52 = vpop.xlane.xlu0 %598 }
 0x58e   :  { %1907 = vrcp.f32 %v599_v52 }
 0x594   :  { %v1908_v57 = vpop.eup %1907 }
 0x595   :  { %v602_v51 = vpop.xlane.xlu1 %601  ;;  %v605_v62 = vmul.f32 %v1908_v57, %v1896_v26  ;;  %v786_v57 = vld [vmem:[%s2671_s12 + $0x50] sm:$0xff] }
 0x59d   :  { %v475_v54 = vpop.xlane.xlu1 %474 }
 0x59e   :  { %1909 = vrcp.f32 %v475_v54  ;;  %v787_v54 = vld [vmem:[%s2671_s12 + $0x58] sm:$0xff] }
 0x59f   :  { %1911 = vrcp.f32 %v602_v51  ;;  %v788_v51 = vld [vmem:[%s2671_s12 + $0x60] sm:$0xff] }
 0x5a0   :  { %v1830_v7 = vpop.permute.xlu0 %1829  ;;  %795 = vmatpush.msrb.mxu1 %v788_v51 }
 0x5a1   :  { %v1831_v58 = vunpack.i.l.bf16 %v1830_v7  ;;  %v1832_v59 = vunpack.i.h.bf16 %v1830_v7 }
 0x5a2   :  { %796 = vmatpush.msrb.mxu1 %v787_v54  ;;  %v1731_v54 = vld [vmem:[%s2664_s5 + $0x28] sm:$0xff] }
 0x5a3   :  { %633 = vmatpush.msra.mxu3 %v1831_v58 }
 0x5a4   :  { %v1910_v60 = vpop.eup %1909  ;;  %797 = vmatpush.msrb.mxu1 %v786_v57 }
 0x5a5   :  { %634 = vmatpush.msra.mxu3 %v1832_v59  ;;  %v479_v63 = vmul.f32 %v1910_v60, %v1902_v41  ;;  %v1912_v2 = vpop.eup %1911  ;;  %v738_v41 = vld [vmem:[%s2669_s10 + $0x8] sm:$0xff] }
 0x5a6   :  { %1722 = vmatmul.msk.f32.vlgmr.msra.gmra.mxu3 %vm207_vm9, %v605_v62  ;;  %v606_v4 = vmul.f32 %v1912_v2, %v1898_v34  ;;  %v785_v59 = vld [vmem:[%s2671_s12 + $0x48] sm:$0xff]  ;;  %v784_v62 = vld [vmem:[%s2671_s12 + $0x40] sm:$0xff]  ;;  %v783_v2 = vld [vmem:[%s2671_s12 + $0x38] sm:$0xff] }
 0x5a7   :  { %1715 = vmatmul.msk.f32.gmra.mxu2 %vm207_vm9, %v479_v63  ;;  %798 = vmatpush.msrb.mxu1 %v785_v59 }
 0x5a8   :  { %v355_v0 = vpop.f32.mrf.mxu2 }
 0x5a9   :  { %1706 = vmatmul.msk.f32.vlgmr.msrb.gmra.mxu0 %vm175_vm8, %v355_v0  ;;  %799 = vmatpush.msrb.mxu1 %v784_v62 }
 0x5aa   :  { %763 = vmatpush.msrb.mxu0 %v740_v39 }
 0x5ab   :  { %800 = vmatpush.msrb.mxu1 %v783_v2 }
 0x5ac   :  { %764 = vmatpush.msrb.mxu0 %v739_v40 }
 0x5ad   :  { %801 = vmatpush.msrb.mxu1 %v782_v9 }
 0x5ae   :  { %1723 = vmatmul.msk.f32.gmra.mxu3 %vm207_vm9, %v606_v4  ;;  %765 = vmatpush.msrb.mxu0 %v738_v41 }
 0x5b0   :  { %v358_v5 = vpop.f32.mrf.mxu2  ;;  %766 = vmatpush.msrb.mxu0 %v737_v42 }
 0x5b1   :  { %1707 = vmatmul.msk.f32.gmra.mxu0 %vm175_vm8, %v358_v5 }
 0x5b9   :  { %v509_v8 = vpop.f32.mrf.mxu2 }
 0x5ba   :  { %1716 = vmatmul.msk.f32.vlgmr.msra.gmra.mxu0 %vm175_vm8, %v509_v8  ;;  %v1861_v8 = vld [vmem:[%s2667_s8] ss:$0 sm:$0xff] }
 0x626   :  { %v384_v13 = vpop.f32.mrf.mxu0 }
 0x627   :  { %v414_v17 = vadd.f32 %v2238_v55, %v384_v13  ;;  %v1862_v13 = vld [vmem:[%s2668_s9] ss:$0 sm:$0xff] }
 0x629   :  { %v636_v10 = vpop.f32.mrf.mxu3 }
 0x62a   :  { %v512_v11 = vpop.f32.mrf.mxu2  ;;  %1724 = vmatmul.msk.f32.vlgmr.msra.gmra.mxu2 %vm175_vm8, %v636_v10 }
 0x62b   :  { %1717 = vmatmul.msk.f32.gmra.mxu0 %vm175_vm8, %v512_v11 }
 0x62e   :  { %v387_v15 = vpop.f32.mrf.mxu0 }
 0x62f   :  { %v417_v24 = vadd.f32 %v2240_v56, %v387_v15  ;;  %v781_v15 = vld [vmem:[%s2671_s12 + $0x28] sm:$0xff] }
 0x630   :  { %802 = vmatpush.msrb.mxu1 %v781_v15 }
 0x631   :  { %v639_v12 = vpop.f32.mrf.mxu3 }
 0x632   :  { %1725 = vmatmul.msk.f32.gmra.mxu2 %vm175_vm8, %v639_v12 }
 0x637   :  { %v538_v16 = vpop.f32.mrf.mxu0 }
 0x638   :  { %v544_v18 = vadd.f32 %v538_v16, %v414_v17 }
 0x6a8   :  { %v541_v23 = vpop.f32.mrf.mxu0 }
 0x6a9   :  { %v545_v26 = vadd.f32 %v541_v23, %v417_v24 }
 0x6ad   :  { %v665_v19 = vpop.f32.mrf.mxu2 }
 0x6ae   :  { %v671_v20 = vadd.f32 %v665_v19, %v544_v18  ;;  %v780_v18 = vld [vmem:[%s2671_s12 + $0x20] sm:$0xff] }
 0x6af   :  { %803 = vmatpush.msrb.mxu1 %v780_v18 }
 0x6b0   :  { %v673_v22 = vadd.f32 %v671_v20, %v2108_v3 }
 0x6b2   :  { %v2285_v25 = vadd.f32 %v1860_v21, %v673_v22 }
 0x6b4   :  { %v683_v27 = vsel %vm70_vm0, %v2285_v25, 0.0 }
 0x6b5   :  { %v668_v28 = vpop.f32.mrf.mxu2  ;;  %684 = vadd.xlane.f32.xlu0 %v683_v27 }
 0x6b6   :  { %v672_v55 = vadd.f32 %v668_v28, %v545_v26  ;;  %v778_v28 = vld [vmem:[%s2671_s12 + $0x10] sm:$0xff] }
 0x6b8   :  { %v674_v29 = vadd.f32 %v672_v55, %v2115_v6  ;;  %v777_v55 = vld [vmem:[%s2671_s12 + $0x8] sm:$0xff] }
 0x6ba   :  { %v2290_v30 = vadd.f32 %v1860_v21, %v674_v29  ;;  %v779_v21 = vld [vmem:[%s2671_s12 + $0x18] sm:$0xff]  ;;  %v776_v29 = vld [vmem:[%s2671_s12] sm:$0xff] }
 0x6bb   :  { %804 = vmatpush.msrb.mxu1 %v779_v21 }
 0x6bc   :  { %v686_v31 = vsel %vm70_vm0, %v2290_v30, 0.0 }
 0x6bd   :  { %687 = vadd.xlane.f32.xlu2 %v686_v31  ;;  %805 = vmatpush.msrb.mxu1 %v778_v28  ;;  %v1863_v31 = vld [vmem:[%s2670_s11] ss:$0 sm:$0xff] }
 0x6bf   :  { %806 = vmatpush.msrb.mxu1 %v777_v55 }
 0x6c1   :  { %807 = vmatpush.msrb.mxu1 %v776_v29 }
 0x728   :  { %v685_v3 = vpop.xlane.xlu0 %684 }
 0x729   :  { %v689_v56 = vmul.f32 %v685_v3, %v2119_v14 }
 0x72b   :  { %v691_v32 = vsub.f32 %v2285_v25, %v689_v56 }
 0x72d   :  { %v693_v33 = vmul.f32 %v691_v32, %v691_v32 }
 0x72f   :  { %v695_v34 = vsel %vm70_vm0, %v693_v33, 0.0 }
 0x730   :  { %696 = vadd.xlane.f32.xlu1 %v695_v34  ;;  %v688_v35 = vpop.xlane.xlu2 %687 }
 0x731   :  { %v690_v36 = vmul.f32 %v688_v35, %v2119_v14 }
 0x733   :  { %v2299_v6 = vsub.f32 %v2290_v30, %v690_v36  ;;  %v1864_v36 = vld [vmem:[%s2696_s13] ss:$0 sm:$0xff] }
 0x735   :  { %v694_v37 = vmul.f32 %v2299_v6, %v2299_v6 }
 0x737   :  { %v698_v38 = vsel %vm70_vm0, %v694_v37, 0.0 }
 0x738   :  { %699 = vadd.xlane.f32.xlu1 %v698_v38 }
 0x7a3   :  { %v697_v43 = vpop.xlane.xlu1 %696 }
 0x7a4   :  { %v701_v44 = vmul.f32 %v697_v43, %v2119_v14 }
 0x7a6   :  { %v703_v45 = vadd.f32 1e-05, %v701_v44 }
 0x7a8   :  { %1913 = vrsqrt.f32 %v703_v45  ;;  %vm711_vm11 = vweird.f32 %v703_v45 }
 0x7ab   :  { %v700_v49 = vpop.xlane.xlu1 %699 }
 0x7ac   :  { %v702_v50 = vmul.f32 %v700_v49, %v2119_v14 }
 0x7ae   :  { %v1914_v52 = vpop.eup %1913  ;;  %v704_v53 = vadd.f32 1e-05, %v702_v50 }
 0x7af   :  { %v706_v7 = vmul.f32 %v1914_v52, %v703_v45  ;;  %vm712_vm10 = vweird.f32 %v1914_v52 }
 0x7b0   :  { %1915 = vrsqrt.f32 %v704_v53  ;;  %vm713_vm12 = vmor %vm711_vm11, %vm712_vm10  ;;  %vm721_vm14 = vweird.f32 %v704_v53 }
 0x7b1   :  { %v707_v58 = vmul.f32 %v1914_v52, %v706_v7  ;;  %v1730_v7 = vld [vmem:[%s2664_s5 + $0x20] sm:$0xff] }
 0x7b3   :  { %v708_v60 = vmul.f32 0.5, %v707_v58 }
 0x7b5   :  { %v709_v63 = vsub.f32 1.5, %v708_v60 }
 0x7b6   :  { %v1916_v0 = vpop.eup %1915 }
 0x7b7   :  { %v710_v4 = vmul.f32 %v1914_v52, %v709_v63  ;;  %v716_v5 = vmul.f32 %v1916_v0, %v704_v53  ;;  %vm722_vm13 = vweird.f32 %v1916_v0  ;;  %v1732_v53 = vld [vmem:[%s2664_s5 + $0x30] sm:$0xff] }
 0x7b8   :  { %vm723_vm15 = vmor %vm721_vm14, %vm722_vm13 }
 0x7b9   :  { %v714_v10 = vsel %vm713_vm12, %v1914_v52, %v710_v4  ;;  %v717_v11 = vmul.f32 %v1916_v0, %v716_v5  ;;  %v1733_v52 = vld [vmem:[%s2664_s5 + $0x38] sm:$0xff] }
 0x7ba   :  { %v725_v12 = vmul.f32 %v714_v10, %v691_v32  ;;  %904 = vmatpush.msrb.mxu3 %v1733_v52 }
 0x7bb   :  { %v718_v16 = vmul.f32 0.5, %v717_v11 }
 0x7bc   :  { %v730_v17 = vmul.f32 %v1861_v8, %v725_v12  ;;  %905 = vmatpush.msrb.mxu3 %v1732_v53  ;;  %v1865_v12 = vld [vmem:[%s2662_s3 + $0x1] ss:$0 sm:$0xff]  ;;  %s2697_s3 = smov 112  }
 0x7bd   :  { %v719_v19 = vsub.f32 1.5, %v718_v16 }
 0x7be   :  { %v735_v20 = vadd.f32 %v1862_v13, %v730_v17  ;;  %906 = vmatpush.msrb.mxu3 %v1731_v54  ;;  %v1866_v17 = vld [vmem:[%s2663_s4 + $0x1] ss:$0 sm:$0xff]  ;;  %s2698_s4 = smov 104  }
 0x7bf   :  { %v720_v22 = vmul.f32 %v1916_v0, %v719_v19 }
 0x7c0   :  { %1726 = vmatmul.msk.f32.vlgmr.msrb.gmra.mxu0 %vm70_vm0, %v735_v20  ;;  %907 = vmatpush.msrb.mxu3 %v1730_v7 }
 0x7c1   :  { %v724_v23 = vsel %vm723_vm15, %v1916_v0, %v720_v22 }
 0x7c2   :  { %v726_v24 = vmul.f32 %v724_v23, %v2299_v6 }
 0x7c4   :  { %v731_v26 = vmul.f32 %v1861_v8, %v726_v24 }
 0x7c6   :  { %v736_v27 = vadd.f32 %v1862_v13, %v731_v26 }
 0x7c8   :  { %1727 = vmatmul.msk.f32.gmra.mxu0 %vm70_vm0, %v736_v27 }
 0x83d   :  { %v768_v3 = vpop.f32.mrf.mxu0 }
 0x83e   :  { %v769_v56 = vadd.f32 %v1863_v31, %v768_v3 }
 0x840   :  { %v774_v32 = vmax.f32 %v769_v56, 0.0 }
 0x842   :  { %808 = vmatmul.f32.vlgmr.msrb.gmra.mxu1 %v774_v32 }
 0x845   :  { %v771_v33 = vpop.f32.mrf.mxu0 }
 0x846   :  { %v772_v34 = vadd.f32 %v1863_v31, %v771_v33 }
 0x848   :  { %v775_v35 = vmax.f32 %v772_v34, 0.0 }
 0x84a   :  { %811 = vmatmul.f32.gmra.mxu1 %v775_v35 }
 0x8bf   :  { %v809_v6 = vpop.f32.mrf.mxu1 }
 0x8c0   :  { %v815_v37 = vadd.f32 %v809_v6, %v2285_v25 }
 0x8c2   :  { %v2382_v38 = vadd.f32 %v1864_v36, %v815_v37 }
 0x8c4   :  { %v827_v39 = vsel %vm70_vm0, %v2382_v38, 0.0 }
 0x8c5   :  { %828 = vadd.xlane.f32.xlu1 %v827_v39 }
 0x8c7   :  { %v812_v40 = vpop.f32.mrf.mxu1 }
 0x8c8   :  { %v816_v41 = vadd.f32 %v812_v40, %v2290_v30 }
 0x8ca   :  { %v2387_v42 = vadd.f32 %v1864_v36, %v816_v41 }
 0x8cc   :  { %v830_v43 = vsel %vm70_vm0, %v2387_v42, 0.0 }
 0x8cd   :  { %831 = vadd.xlane.f32.xlu1 %v830_v43 }
 0x938   :  { %v829_v44 = vpop.xlane.xlu1 %828 }
 0x939   :  { %v833_v45 = vmul.f32 %v829_v44, %v2119_v14 }
 0x93b   :  { %v835_v25 = vsub.f32 %v2382_v38, %v833_v45 }
 0x93d   :  { %v837_v46 = vmul.f32 %v835_v25, %v835_v25 }
 0x93f   :  { %v839_v47 = vsel %vm70_vm0, %v837_v46, 0.0 }
 0x940   :  { %840 = vadd.xlane.f32.xlu1 %v839_v47  ;;  %v832_v48 = vpop.xlane.xlu1 %831  ;;  %v1736_v47 = vld [vmem:[%s2665_s6 + $0x20] sm:$0xff] }
 0x941   :  { %v834_v49 = vmul.f32 %v832_v48, %v2119_v14  ;;  %1160 = vmatpush.msra.mxu1 %v1736_v47 }
 0x943   :  { %v836_v30 = vsub.f32 %v2387_v42, %v834_v49 }
 0x945   :  { %v838_v50 = vmul.f32 %v836_v30, %v836_v30 }
 0x947   :  { %v842_v51 = vsel %vm70_vm0, %v838_v50, 0.0 }
 0x948   :  { %843 = vadd.xlane.f32.xlu1 %v842_v51 }
 0x9b3   :  { %v841_v57 = vpop.xlane.xlu1 %840 }
 0x9b4   :  { %v845_v58 = vmul.f32 %v841_v57, %v2119_v14 }
 0x9b6   :  { %v847_v59 = vadd.f32 1e-05, %v845_v58 }
 0x9b8   :  { %1917 = vrsqrt.f32 %v847_v59  ;;  %vm855_vm2 = vweird.f32 %v847_v59 }
 0x9bb   :  { %v844_v60 = vpop.xlane.xlu1 %843 }
 0x9bc   :  { %v846_v62 = vmul.f32 %v844_v60, %v2119_v14 }
 0x9be   :  { %v1918_v63 = vpop.eup %1917  ;;  %v848_v0 = vadd.f32 1e-05, %v846_v62 }
 0x9bf   :  { %v850_v2 = vmul.f32 %v1918_v63, %v847_v59  ;;  %vm856_vm1 = vweird.f32 %v1918_v63 }
 0x9c0   :  { %1919 = vrsqrt.f32 %v848_v0  ;;  %vm857_vm3 = vmor %vm855_vm2, %vm856_vm1  ;;  %vm865_vm5 = vweird.f32 %v848_v0 }
 0x9c1   :  { %v851_v4 = vmul.f32 %v1918_v63, %v850_v2 }
 0x9c3   :  { %v852_v5 = vmul.f32 0.5, %v851_v4 }
 0x9c5   :  { %v853_v8 = vsub.f32 1.5, %v852_v5 }
 0x9c6   :  { %v1920_v9 = vpop.eup %1919 }
 0x9c7   :  { %v854_v10 = vmul.f32 %v1918_v63, %v853_v8  ;;  %v860_v11 = vmul.f32 %v1920_v9, %v848_v0  ;;  %vm866_vm4 = vweird.f32 %v1920_v9 }
 0x9c8   :  { %vm867_vm6 = vmor %vm865_vm5, %vm866_vm4 }
 0x9c9   :  { %v858_v13 = vsel %vm857_vm3, %v1918_v63, %v854_v10  ;;  %v861_v15 = vmul.f32 %v1920_v9, %v860_v11 }
 0x9ca   :  { %v869_v16 = vmul.f32 %v858_v13, %v835_v25 }
 0x9cb   :  { %v862_v18 = vmul.f32 0.5, %v861_v15 }
 0x9cc   :  { %v874_v19 = vmul.f32 %v1865_v12, %v869_v16 }
 0x9cd   :  { %v863_v20 = vsub.f32 1.5, %v862_v18 }
 0x9ce   :  { %v879_v21 = vadd.f32 %v1866_v17, %v874_v19 }
 0x9cf   :  { %v864_v22 = vmul.f32 %v1920_v9, %v863_v20  ;;  %v1961_v20 = vld [vmem:[%s2695_s21] sm:$0xff] }
 0x9d0   :  { %1734 = vmatmul.msk.f32.vlgmr.msrb.gmra.mxu3 %vm70_vm0, %v879_v21 }
 0x9d1   :  { %v868_v23 = vsel %vm867_vm6, %v1920_v9, %v864_v22 }
 0x9d2   :  { %v870_v24 = vmul.f32 %v868_v23, %v836_v30  ;;  %v1962_v23 = vld [vmem:[%s2695_s21 + $0x8] sm:$0xff]  ;;  %s2699_s21 = smov 56  }
 0x9d4   :  { %v875_v26 = vmul.f32 %v1865_v12, %v870_v24 }
 0x9d6   :  { %v880_v27 = vadd.f32 %v1866_v17, %v875_v26 }
 0x9d8   :  { %1735 = vmatmul.msk.f32.gmra.mxu3 %vm70_vm0, %v880_v27 }
 0xa53   :  { %v909_v28 = vpop.f32.mrf.mxu3 }
 0xa54   :  { %922 = vrot.lane.b32.xlu0 %v909_v28, %s1990_s19 }
 0xa5b   :  { %v912_v55 = vpop.f32.mrf.mxu3 }
 0xa5c   :  { %924 = vrot.lane.b32.xlu2 %v912_v55, %s1990_s19  ;;  %v2429_v36 = vpack.i.bf16 %v909_v28, %v912_v55 }
 0xab6   :  { %v925_v29 = vpop.permute.xlu2 %924 }
 0xab7   :  { %1740 = vmatpush.xpose.msk.msrb.mxu2 %vm175_vm8, %v925_v29 }
 0xac6   :  { %v923_v31 = vpop.permute.xlu0 %922 }
 0xac7   :  { %1741 = vmatpush.xpose.msk.msrb.mxu2 %vm175_vm8, %v923_v31 }
 0xaca   :  { %1742 = vmatmul.msk.f32.vlgmr.msrb.gmra.mxu2 %vm175_vm8, %v909_v28 }
 0xad2   :  { %1743 = vmatmul.msk.f32.gmra.mxu2 %vm175_vm8, %v912_v55 }
 0xb4d   :  { %v951_v3 = vpop.f32.mrf.mxu2 }
 0xb4e   :  { %v952_v56 = vadd.f32 %v951_v3, %v2168_v61 }
 0xb50   :  { %v957_v32 = vsel %vm207_vm9, %v952_v56, -inf }
 0xb51   :  { %958 = vmax.xlane.f32.xlu1 %v957_v32 }
 0xb55   :  { %v954_v33 = vpop.f32.mrf.mxu2 }
 0xb56   :  { %v955_v34 = vadd.f32 %v954_v33, %v2175_v1 }
 0xb58   :  { %v960_v35 = vsel %vm207_vm9, %v955_v34, -inf }
 0xb59   :  { %961 = vmax.xlane.f32.xlu1 %v960_v35 }
 0xb72   :  { %1839 = vrot.lane.b32.xlu1 %v2429_v36, %s1991_s2 }
 0xb7a   :  { %1020 = vrot.lane.b32.xlu1 %v912_v55, %s1992_s23 }
 0xb82   :  { %1018 = vrot.lane.b32.xlu1 %v909_v28, %s1992_s23 }
 0xb8a   :  { %1016 = vrot.lane.b32.xlu1 %v912_v55, %s1993_s24 }
 0xb92   :  { %1301 = vrot.lane.b32.xlu1 %v912_v55, %s1994_s25 }
 0xb9a   :  { %1172 = vrot.lane.b32.xlu1 %v909_v28, %s1996_s29 }
 0xba2   :  { %1168 = vrot.lane.b32.xlu1 %v909_v28, %s2697_s3 }
 0xbaa   :  { %1297 = vrot.lane.b32.xlu1 %v912_v55, %s2698_s4 }
 0xbc4   :  { %v959_v6 = vpop.xlane.xlu1 %958 }
 0xbc5   :  { %v963_v37 = vsub.f32 %v952_v56, %v959_v6 }
 0xbc7   :  { %v965_v39 = vmul.f32 1.442695, %v963_v37 }
 0xbc9   :  { %1921 = vpow2.f32 %v965_v39 }
 0xbcc   :  { %v962_v40 = vpop.xlane.xlu1 %961 }
 0xbcd   :  { %v964_v41 = vsub.f32 %v955_v34, %v962_v40 }
 0xbcf   :  { %v1922_v43 = vpop.eup %1921  ;;  %v967_v44 = vmul.f32 1.442695, %v964_v41 }
 0xbd0   :  { %v969_v45 = vsel %vm207_vm9, %v1922_v43, 0.0 }
 0xbd1   :  { %1923 = vpow2.f32 %v967_v44  ;;  %970 = vadd.xlane.f32.xlu0 %v969_v45 }
 0xbd7   :  { %v1924_v25 = vpop.eup %1923 }
 0xbd8   :  { %v972_v46 = vsel %vm207_vm9, %v1924_v25, 0.0 }
 0xbd9   :  { %973 = vadd.xlane.f32.xlu2 %v972_v46 }
 0xbe4   :  { %v1840_v48 = vpop.permute.xlu1 %1839 }
 0xbe5   :  { %v1841_v49 = vunpack.i.l.bf16 %v1840_v48  ;;  %1014 = vrot.lane.b32.xlu0 %v909_v28, %s1993_s24  ;;  %v1842_v30 = vunpack.i.h.bf16 %v1840_v48 }
 0xbe7   :  { %1005 = vmatpush.msra.mxu0 %v1841_v49 }
 0xbe9   :  { %1006 = vmatpush.msra.mxu0 %v1842_v30 }
 0xbec   :  { %v1021_v50 = vpop.permute.xlu1 %1020 }
 0xbed   :  { %1299 = vrot.lane.b32.xlu0 %v909_v28, %s1994_s25  ;;  %1746 = vmatpush.xpose.msk.msra.mxu3 %vm175_vm8, %v1021_v50 }
 0xbf1   :  { %1174 = vrot.lane.b32.xlu2 %v912_v55, %s1996_s29 }
 0xbf4   :  { %v1019_v51 = vpop.permute.xlu1 %1018 }
 0xbf5   :  { %1170 = vrot.lane.b32.xlu0 %v912_v55, %s2697_s3  ;;  %1747 = vmatpush.xpose.msk.msra.mxu3 %vm175_vm8, %v1019_v51 }
 0xbf9   :  { %1295 = vrot.lane.b32.xlu2 %v909_v28, %s2698_s4 }
 0xbfc   :  { %v1017_v52 = vpop.permute.xlu1 %1016 }
 0xc04   :  { %v1302_v53 = vpop.permute.xlu1 %1301 }
 0xc05   :  { %1764 = vmatpush.xpose.msk.msrb.mxu1 %vm175_vm8, %v1302_v53 }
 0xc0c   :  { %v1173_v0 = vpop.permute.xlu1 %1172 }
 0xc14   :  { %v1169_v4 = vpop.permute.xlu1 %1168 }
 0xc1c   :  { %v1298_v15 = vpop.permute.xlu1 %1297 }
 0xc44   :  { %v971_v54 = vpop.xlane.xlu0 %970 }
 0xc45   :  { %1925 = vrcp.f32 %v971_v54 }
 0xc4b   :  { %v1926_v7 = vpop.eup %1925 }
 0xc4c   :  { %v977_v57 = vmul.f32 %v1926_v7, %v1922_v43  ;;  %v974_v58 = vpop.xlane.xlu2 %973 }
 0xc4d   :  { %1927 = vrcp.f32 %v974_v58 }
 0xc4e   :  { %1744 = vmatmul.msk.f32.vlgmr.msra.gmra.mxu0 %vm207_vm9, %v977_v57 }
 0xc53   :  { %v1928_v59 = vpop.eup %1927 }
 0xc54   :  { %v1175_v60 = vpop.permute.xlu2 %1174  ;;  %v978_v62 = vmul.f32 %v1928_v59, %v1924_v25 }
 0xc55   :  { %1756 = vmatpush.xpose.msk.msrb.mxu3 %vm175_vm8, %v1175_v60 }
 0xc56   :  { %1745 = vmatmul.msk.f32.gmra.mxu0 %vm207_vm9, %v978_v62 }
 0xc57   :  { %v1015_v63 = vpop.permute.xlu0 %1014 }
 0xc58   :  { %1748 = vmatmul.msk.f32.vlgmr.msra.gmra.mxu3 %vm175_vm8, %v1015_v63 }
 0xc59   :  { %1757 = vmatpush.xpose.msk.msrb.mxu3 %vm175_vm8, %v1173_v0 }
 0xc5c   :  { %v1296_v10 = vpop.permute.xlu2 %1295 }
 0xc5f   :  { %v1300_v2 = vpop.permute.xlu0 %1299 }
 0xc60   :  { %1749 = vmatmul.msk.f32.gmra.mxu3 %vm175_vm8, %v1017_v52  ;;  %1765 = vmatpush.xpose.msk.msrb.mxu1 %vm175_vm8, %v1300_v2 }
 0xc67   :  { %v1171_v5 = vpop.permute.xlu0 %1170 }
 0xc68   :  { %1758 = vmatmul.msk.f32.vlgmr.msrb.gmra.mxu3 %vm175_vm8, %v1169_v4 }
 0xc70   :  { %1759 = vmatmul.msk.f32.gmra.mxu3 %vm175_vm8, %v1171_v5 }
 0xccb   :  { %v1008_v8 = vpop.f32.mrf.mxu0 }
 0xccc   :  { %1754 = vmatmul.msk.f32.vlgmr.msra.gmra.mxu1 %vm175_vm8, %v1008_v8 }
 0xcd3   :  { %v1011_v9 = vpop.f32.mrf.mxu0 }
 0xcd4   :  { %1755 = vmatmul.msk.f32.gmra.mxu1 %vm175_vm8, %v1011_v9 }
 0xcdb   :  { %v1047_v11 = vpop.f32.mrf.mxu3 }
 0xcdc   :  { %v1048_v12 = vadd.f32 %v1047_v11, %v2168_v61  ;;  %1766 = vmatmul.msk.f32.vlgmr.msrb.gmra.mxu1 %vm175_vm8, %v1296_v10 }
 0xcde   :  { %v1053_v13 = vsel %vm207_vm9, %v1048_v12, -inf }
 0xcdf   :  { %1054 = vmax.xlane.f32.xlu2 %v1053_v13 }
 0xce3   :  { %v1050_v16 = vpop.f32.mrf.mxu3 }
 0xce4   :  { %v1051_v17 = vadd.f32 %v1050_v16, %v2175_v1  ;;  %1767 = vmatmul.msk.f32.gmra.mxu1 %vm175_vm8, %v1298_v15 }
 0xce6   :  { %v1056_v18 = vsel %vm207_vm9, %v1051_v17, -inf }
 0xce7   :  { %1057 = vmax.xlane.f32.xlu0 %v1056_v18 }
 0xceb   :  { %v1201_v19 = vpop.f32.mrf.mxu3 }
 0xcec   :  { %v1202_v61 = vadd.f32 %v1961_v20, %v1201_v19 }
 0xcee   :  { %v1207_v21 = vsel %vm207_vm9, %v1202_v61, -inf }
 0xcef   :  { %1208 = vmax.xlane.f32.xlu2 %v1207_v21 }
 0xcf3   :  { %v1204_v22 = vpop.f32.mrf.mxu3 }
 0xcf4   :  { %v2477_v1 = vadd.f32 %v1962_v23, %v1204_v22 }
 0xcf6   :  { %v1210_v24 = vsel %vm207_vm9, %v2477_v1, -inf }
 0xcf7   :  { %1211 = vmax.xlane.f32.xlu2 %v1210_v24 }
 0xd49   :  { %v2481_v26 = vpop.f32.mrf.mxu1 }
 0xd51   :  { %v2483_v27 = vpop.f32.mrf.mxu1 }
 0xd52   :  { %v1055_v28 = vpop.xlane.xlu2 %1054 }
 0xd53   :  { %v1059_v55 = vsub.f32 %v1048_v12, %v1055_v28 }
 0xd55   :  { %v1061_v29 = vmul.f32 1.442695, %v1059_v55 }
 0xd57   :  { %1929 = vpow2.f32 %v1061_v29 }
 0xd59   :  { %v1328_v31 = vpop.f32.mrf.mxu1 }
 0xd5a   :  { %v1058_v3 = vpop.xlane.xlu0 %1057  ;;  %v1329_v6 = vadd.f32 %v1961_v20, %v1328_v31  ;;  %v1737_v20 = vld [vmem:[%s2665_s6 + $0x28] sm:$0xff] }
 0xd5b   :  { %v1060_v56 = vsub.f32 %v1051_v17, %v1058_v3  ;;  %1131 = vmatpush.msrb.mxu0 %v1737_v20  ;;  %v1868_v20 = vld [vmem:[%s2667_s8 + $0x1] ss:$0 sm:$0xff]  ;;  %s2003_s8 = smov 8  }
 0xd5c   :  { %v1334_v25 = vsel %vm207_vm9, %v1329_v6, -inf }
 0xd5d   :  { %v1930_v32 = vpop.eup %1929  ;;  %v1063_v33 = vmul.f32 1.442695, %v1060_v56 }
 0xd5e   :  { %v1065_v34 = vsel %vm207_vm9, %v1930_v32, 0.0 }
 0xd5f   :  { %1931 = vpow2.f32 %v1063_v33  ;;  %1066 = vadd.xlane.f32.xlu1 %v1065_v34 }
 0xd61   :  { %v1331_v35 = vpop.f32.mrf.mxu1 }
 0xd62   :  { %v1332_v37 = vadd.f32 %v1962_v23, %v1331_v35  ;;  %v1209_v39 = vpop.xlane.xlu2 %1208  ;;  %v1739_v35 = vld [vmem:[%s2665_s6 + $0x38] sm:$0xff] }
 0xd63   :  { %v1213_v40 = vsub.f32 %v1202_v61, %v1209_v39  ;;  %v1738_v61 = vld [vmem:[%s2665_s6 + $0x30] sm:$0xff] }
 0xd64   :  { %v1337_v41 = vsel %vm207_vm9, %v1332_v37, -inf  ;;  %1285 = vmatpush.msra.mxu0 %v1738_v61 }
 0xd65   :  { %v1932_v43 = vpop.eup %1931  ;;  %v1215_v44 = vmul.f32 1.442695, %v1213_v40  ;;  %1338 = vmax.xlane.f32.xlu0 %v1337_v41 }
 0xd66   :  { %v1068_v45 = vsel %vm207_vm9, %v1932_v43, 0.0 }
 0xd67   :  { %1933 = vpow2.f32 %v1215_v44  ;;  %1069 = vadd.xlane.f32.xlu2 %v1068_v45  ;;  %1335 = vmax.xlane.f32.xlu1 %v1334_v25 }
 0xd6a   :  { %v1212_v48 = vpop.xlane.xlu2 %1211 }
 0xd6b   :  { %v1214_v16 = vsub.f32 %v2477_v1, %v1212_v48 }
 0xd6d   :  { %v1934_v46 = vpop.eup %1933  ;;  %v1217_v17 = vmul.f32 1.442695, %v1214_v16 }
 0xd6e   :  { %v1219_v47 = vsel %vm207_vm9, %v1934_v46, 0.0 }
 0xd6f   :  { %1220 = vadd.xlane.f32.xlu2 %v1219_v47  ;;  %v1867_v47 = vld [vmem:[%s2666_s7 + $0x1] ss:$0 sm:$0xff] }
 0xd79   :  { %1844 = vrot.lane.b32.xlu0 %v2429_v36, %s2699_s21 }
 0xd87   :  { %1854 = vrot.lane.b32.xlu2 %v2429_v36, %s2700_s28 }
 0xdd2   :  { %v1067_v49 = vpop.xlane.xlu1 %1066 }
 0xdd8   :  { %v1339_v30 = vpop.xlane.xlu0 %1338 }
 0xdd9   :  { %v1341_v50 = vsub.f32 %v1332_v37, %v1339_v30 }
 0xdda   :  { %v1070_v51 = vpop.xlane.xlu2 %1069  ;;  %v1336_v52 = vpop.xlane.xlu1 %1335 }
 0xddb   :  { %v1344_v53 = vmul.f32 1.442695, %v1341_v50  ;;  %v1340_v54 = vsub.f32 %v1329_v6, %v1336_v52 }
 0xddd   :  { %1935 = vpow2.f32 %v1344_v53  ;;  %v1342_v7 = vmul.f32 1.442695, %v1340_v54 }
 0xddf   :  { %1937 = vpow2.f32 %v1342_v7 }
 0xde0   :  { %1939 = vrcp.f32 %v1067_v49 }
 0xde1   :  { %1941 = vrcp.f32 %v1070_v51 }
 0xde2   :  { %v1221_v58 = vpop.xlane.xlu2 %1220 }
 0xde3   :  { %v1936_v57 = vpop.eup %1935  ;;  %1943 = vrcp.f32 %v1221_v58 }
 0xde4   :  { %v1349_v59 = vsel %vm207_vm9, %v1936_v57, 0.0  ;;  %1945 = vpow2.f32 %v1217_v17 }
 0xde5   :  { %v1938_v60 = vpop.eup %1937  ;;  %1350 = vadd.xlane.f32.xlu0 %v1349_v59 }
 0xde6   :  { %v1346_v62 = vsel %vm207_vm9, %v1938_v60, 0.0  ;;  %v1940_v0 = vpop.eup %1939 }
 0xde7   :  { %1347 = vadd.xlane.f32.xlu1 %v1346_v62  ;;  %v1073_v8 = vmul.f32 %v1940_v0, %v1930_v32  ;;  %v1942_v11 = vpop.eup %1941 }
 0xde8   :  { %v1074_v12 = vmul.f32 %v1942_v11, %v1932_v43 }
 0xde9   :  { %v1944_v13 = vpop.eup %1943 }
 0xdea   :  { %v1855_v4 = vpop.permute.xlu2 %1854  ;;  %v1227_v15 = vmul.f32 %v1944_v13, %v1934_v46  ;;  %v1946_v18 = vpop.eup %1945 }
 0xdeb   :  { %v1845_v63 = vpop.permute.xlu0 %1844  ;;  %v1856_v9 = vunpack.i.l.bf16 %v1855_v4  ;;  %v1857_v10 = vunpack.i.h.bf16 %v1855_v4  ;;  %v1222_v19 = vsel %vm207_vm9, %v1946_v18, 0.0  ;;  %v1778_v4 = vld [vmem:[%s2669_s10 + $0x38] sm:$0xff] }
 0xdec   :  { %v1846_v2 = vunpack.i.l.bf16 %v1845_v63  ;;  %v1847_v5 = vunpack.i.h.bf16 %v1845_v63 }
 0xdee   :  { %1101 = vmatpush.msra.mxu2 %v1846_v2 }
 0xdf0   :  { %1102 = vmatpush.msra.mxu2 %v1847_v5  ;;  %v1777_v5 = vld [vmem:[%s2669_s10 + $0x30] sm:$0xff] }
 0xdf1   :  { %1750 = vmatmul.msk.f32.vlgmr.msra.gmra.mxu2 %vm207_vm9, %v1073_v8  ;;  %v1776_v8 = vld [vmem:[%s2669_s10 + $0x28] sm:$0xff] }
 0xdf2   :  { %1255 = vmatpush.msrb.mxu2 %v1856_v9  ;;  %v1775_v9 = vld [vmem:[%s2669_s10 + $0x20] sm:$0xff]  ;;  %s2001_s10 = smov [#allocation2]  }
 0xdf3   :  { %s1678_s28 = sshll.u32 %s2001_s10, 4  ;;  %s1679_s28 = int_to_ptr.vmem [resolvable:$true] %s1678_s28 }
 0xdf4   :  { %1256 = vmatpush.msrb.mxu2 %v1857_v10 }
 0xdf6   :  { %1412 = vmatpush.msra.mxu2 %v1739_v35 }
 0xdf9   :  { %1751 = vmatmul.msk.f32.gmra.mxu2 %vm207_vm9, %v1074_v12 }
 0xe00   :  { %1849 = vrot.lane.b32.xlu1 %v2429_v36, %s2701_s1 }
 0xe01   :  { %1760 = vmatmul.msk.f32.vlgmr.msrb.gmra.mxu2 %vm207_vm9, %v1227_v15 }
 0xe2a   :  { %1223 = vadd.xlane.f32.xlu1 %v1222_v19 }
 0xe58   :  { %v1351_v21 = vpop.xlane.xlu0 %1350 }
 0xe5a   :  { %v1348_v36 = vpop.xlane.xlu1 %1347 }
 0xe5b   :  { %1947 = vrcp.f32 %v1348_v36 }
 0xe5c   :  { %1949 = vrcp.f32 %v1351_v21  ;;  %v1869_v21 = vld [vmem:[%s2668_s9 + $0x1] ss:$0 sm:$0xff] }
 0xe61   :  { %v1948_v23 = vpop.eup %1947 }
 0xe62   :  { %v1354_v55 = vmul.f32 %v1948_v23, %v1938_v60  ;;  %v1950_v29 = vpop.eup %1949 }
 0xe63   :  { %v1355_v3 = vmul.f32 %v1950_v29, %v1936_v57 }
 0xe72   :  { %v1850_v22 = vpop.permute.xlu1 %1849 }
 0xe73   :  { %v1851_v1 = vunpack.i.l.bf16 %v1850_v22  ;;  %v1852_v28 = vunpack.i.h.bf16 %v1850_v22 }
 0xe74   :  { %v1104_v24 = vpop.f32.mrf.mxu2 }
 0xe75   :  { %1752 = vmatmul.msk.f32.vlgmr.msrb.gmra.mxu0 %vm175_vm8, %v1104_v24  ;;  %1382 = vmatpush.msra.mxu3 %v1851_v1  ;;  %v1797_v1 = vld [vmem:[%s2671_s12 + $0xf8] sm:$0xff]  ;;  %v1796_v24 = vld [vmem:[%s2671_s12 + $0xf0] sm:$0xff] }
 0xe76   :  { %1517 = vmatpush.msrb.mxu0 %v1778_v4  ;;  %1547 = vmatpush.msra.mxu1 %v1797_v1 }
 0xe77   :  { %1383 = vmatpush.msra.mxu3 %v1852_v28  ;;  %v1795_v28 = vld [vmem:[%s2671_s12 + $0xe8] sm:$0xff] }
 0xe78   :  { %1768 = vmatmul.msk.f32.vlgmr.msra.gmra.mxu3 %vm207_vm9, %v1354_v55  ;;  %1518 = vmatpush.msrb.mxu0 %v1777_v5 }
 0xe79   :  { %1548 = vmatpush.msra.mxu1 %v1796_v24 }
 0xe7a   :  { %1519 = vmatpush.msrb.mxu0 %v1776_v8 }
 0xe7b   :  { %1549 = vmatpush.msra.mxu1 %v1795_v28 }
 0xe7c   :  { %v1107_v31 = vpop.f32.mrf.mxu2  ;;  %1520 = vmatpush.msrb.mxu0 %v1775_v9 }
 0xe7d   :  { %1753 = vmatmul.msk.f32.gmra.mxu0 %vm175_vm8, %v1107_v31  ;;  %v1794_v31 = vld [vmem:[%s2671_s12 + $0xe0] sm:$0xff] }
 0xe7e   :  { %1550 = vmatpush.msra.mxu1 %v1794_v31  ;;  %v1872_v31 = vld [vmem:[%s2673_s14] ss:$0 sm:$0xff] }
 0xe80   :  { %1769 = vmatmul.msk.f32.gmra.mxu3 %vm207_vm9, %v1355_v3 }
 0xe84   :  { %v1258_v56 = vpop.f32.mrf.mxu2 }
 0xe85   :  { %1762 = vmatmul.msk.f32.vlgmr.msra.gmra.mxu0 %vm175_vm8, %v1258_v56  ;;  %v1793_v56 = vld [vmem:[%s2671_s12 + $0xd8] sm:$0xff] }
 0xe86   :  { %1551 = vmatpush.msra.mxu1 %v1793_v56 }
 0xe9d   :  { %v1224_v32 = vpop.xlane.xlu1 %1223 }
 0xe9e   :  { %1951 = vrcp.f32 %v1224_v32  ;;  %v1792_v32 = vld [vmem:[%s2671_s12 + $0xd0] sm:$0xff] }
 0xe9f   :  { %1552 = vmatpush.msra.mxu1 %v1792_v32  ;;  %v1873_v32 = vld [vmem:[%s2674_s15] ss:$0 sm:$0xff] }
 0xea4   :  { %v1952_v33 = vpop.eup %1951 }
 0xea5   :  { %v1228_v34 = vmul.f32 %v1952_v33, %v1946_v18  ;;  %v1791_v33 = vld [vmem:[%s2671_s12 + $0xc8] sm:$0xff] }
 0xea6   :  { %1553 = vmatpush.msra.mxu1 %v1791_v33 }
 0xea7   :  { %1761 = vmatmul.msk.f32.gmra.mxu2 %vm207_vm9, %v1228_v34  ;;  %v1790_v34 = vld [vmem:[%s2671_s12 + $0xc0] sm:$0xff] }
 0xea8   :  { %1554 = vmatpush.msra.mxu1 %v1790_v34 }
 0xef2   :  { %v1133_v40 = vpop.f32.mrf.mxu0 }
 0xef3   :  { %v1163_v44 = vadd.f32 %v2481_v26, %v1133_v40 }
 0xefa   :  { %v1136_v41 = vpop.f32.mrf.mxu0 }
 0xefb   :  { %v1385_v6 = vpop.f32.mrf.mxu3  ;;  %v1166_v50 = vadd.f32 %v2483_v27, %v1136_v41  ;;  %v1787_v41 = vld [vmem:[%s2671_s12 + $0xa8] sm:$0xff] }
 0xefc   :  { %1770 = vmatmul.msk.f32.vlgmr.msra.gmra.mxu2 %vm175_vm8, %v1385_v6  ;;  %v1789_v6 = vld [vmem:[%s2671_s12 + $0xb8] sm:$0xff] }
 0xefd   :  { %1555 = vmatpush.msra.mxu1 %v1789_v6 }
 0xf02   :  { %v1287_v43 = vpop.f32.mrf.mxu0 }
 0xf03   :  { %v1388_v37 = vpop.f32.mrf.mxu3  ;;  %v1293_v45 = vadd.f32 %v1287_v43, %v1163_v44  ;;  %v1786_v44 = vld [vmem:[%s2671_s12 + $0xa0] sm:$0xff] }
 0xf04   :  { %1771 = vmatmul.msk.f32.gmra.mxu2 %vm175_vm8, %v1388_v37 }
 0xf2a   :  { %v1261_v39 = vpop.f32.mrf.mxu2 }
 0xf2b   :  { %1763 = vmatmul.msk.f32.gmra.mxu0 %vm175_vm8, %v1261_v39  ;;  %v1788_v39 = vld [vmem:[%s2671_s12 + $0xb0] sm:$0xff] }
 0xf2c   :  { %1556 = vmatpush.msra.mxu1 %v1788_v39 }
 0xf2e   :  { %1557 = vmatpush.msra.mxu1 %v1787_v41 }
 0xf30   :  { %1558 = vmatpush.msra.mxu1 %v1786_v44 }
 0xf7f   :  { %v1414_v25 = vpop.f32.mrf.mxu2 }
 0xf80   :  { %v1420_v46 = vadd.f32 %v1414_v25, %v1293_v45  ;;  %v1785_v25 = vld [vmem:[%s2671_s12 + $0x98] sm:$0xff] }
 0xf81   :  { %1559 = vmatpush.msra.mxu1 %v1785_v25 }
 0xf82   :  { %v1422_v48 = vadd.f32 %v1420_v46, %v2382_v38 }
 0xf84   :  { %v2526_v49 = vadd.f32 %v1867_v47, %v1422_v48 }
 0xf86   :  { %v1435_v30 = vsel %vm70_vm0, %v2526_v49, 0.0 }
 0xf87   :  { %1436 = vadd.xlane.f32.xlu2 %v1435_v30  ;;  %v1417_v26 = vpop.f32.mrf.mxu2 }
 0xfa8   :  { %v1290_v51 = vpop.f32.mrf.mxu0 }
 0xfa9   :  { %v1294_v52 = vadd.f32 %v1290_v51, %v1166_v50  ;;  %v1784_v51 = vld [vmem:[%s2671_s12 + $0x90] sm:$0xff] }
 0xfaa   :  { %1560 = vmatpush.msra.mxu1 %v1784_v51 }
 0xfab   :  { %v1421_v53 = vadd.f32 %v1417_v26, %v1294_v52  ;;  %v1783_v52 = vld [vmem:[%s2671_s12 + $0x88] sm:$0xff]  ;;  %v1782_v26 = vld [vmem:[%s2671_s12 + $0x80] sm:$0xff] }
 0xfac   :  { %1561 = vmatpush.msra.mxu1 %v1783_v52 }
 0xfad   :  { %v1423_v54 = vadd.f32 %v1421_v53, %v2387_v42  ;;  %v1870_v53 = vld [vmem:[%s2670_s11 + $0x1] ss:$0 sm:$0xff] }
 0xfae   :  { %1562 = vmatpush.msra.mxu1 %v1782_v26 }
 0xfaf   :  { %v2532_v7 = vadd.f32 %v1867_v47, %v1423_v54 }
 0xfb1   :  { %v1438_v57 = vsel %vm70_vm0, %v2532_v7, 0.0 }
 0xfb2   :  { %1439 = vadd.xlane.f32.xlu0 %v1438_v57 }
 0xffa   :  { %v1437_v38 = vpop.xlane.xlu2 %1436 }
 0xffb   :  { %v1441_v58 = vmul.f32 %v1437_v38, %v2119_v14 }
 0xffd   :  { %v1443_v59 = vsub.f32 %v2526_v49, %v1441_v58 }
 0xfff   :  { %v1445_v60 = vmul.f32 %v1443_v59, %v1443_v59 }
0x1001   :  { %v1447_v27 = vsel %vm70_vm0, %v1445_v60, 0.0 }
0x1002   :  { %1448 = vadd.xlane.f32.xlu0 %v1447_v27  ;;  %v1871_v27 = vld [vmem:[%s2696_s13 + $0x1] ss:$0 sm:$0xff] }
0x1025   :  { %v1440_v62 = vpop.xlane.xlu0 %1439 }
0x1026   :  { %v1442_v63 = vmul.f32 %v1440_v62, %v2119_v14 }
0x1028   :  { %v2541_v42 = vsub.f32 %v2532_v7, %v1442_v63 }
0x102a   :  { %v1446_v0 = vmul.f32 %v2541_v42, %v2541_v42 }
0x102c   :  { %v1450_v2 = vsel %vm70_vm0, %v1446_v0, 0.0 }
0x102d   :  { %1451 = vadd.xlane.f32.xlu0 %v1450_v2 }
0x1075   :  { %v1449_v10 = vpop.xlane.xlu0 %1448 }
0x1076   :  { %v1453_v11 = vmul.f32 %v1449_v10, %v2119_v14 }
0x1078   :  { %v1455_v12 = vadd.f32 1e-05, %v1453_v11 }
0x107a   :  { %1953 = vrsqrt.f32 %v1455_v12  ;;  %vm1463_vm8 = vweird.f32 %v1455_v12 }
0x1080   :  { %v1954_v13 = vpop.eup %1953 }
0x1081   :  { %v1458_v15 = vmul.f32 %v1954_v13, %v1455_v12  ;;  %vm1464_vm7 = vweird.f32 %v1954_v13 }
0x1082   :  { %vm1465_vm9 = vmor %vm1463_vm8, %vm1464_vm7 }
0x1083   :  { %v1459_v16 = vmul.f32 %v1954_v13, %v1458_v15 }
0x1085   :  { %v1460_v17 = vmul.f32 0.5, %v1459_v16 }
0x1087   :  { %v1461_v18 = vsub.f32 1.5, %v1460_v17 }
0x1089   :  { %v1462_v19 = vmul.f32 %v1954_v13, %v1461_v18 }
0x108b   :  { %v1466_v61 = vsel %vm1465_vm9, %v1954_v13, %v1462_v19  ;;  %v1637_v19 = vld [vmem:[%s2675_s16 + $0x10] sm:$0xff] }
0x108c   :  { %v1477_v36 = vmul.f32 %v1466_v61, %v1443_v59  ;;  %v1635_v61 = vld [vmem:[%s2675_s16] sm:$0xff] }
0x108e   :  { %v1482_v22 = vmul.f32 %v1868_v20, %v1477_v36 }
0x1090   :  { %v1487_v23 = vadd.f32 %v1869_v21, %v1482_v22 }
0x1092   :  { %1780 = vmatmul.msk.f32.vlgmr.msrb.gmra.mxu0 %vm70_vm0, %v1487_v23 }
0x10a0   :  { %v1452_v55 = vpop.xlane.xlu0 %1451 }
0x10a1   :  { %v1454_v29 = vmul.f32 %v1452_v55, %v2119_v14 }
0x10a3   :  { %v1456_v3 = vadd.f32 1e-05, %v1454_v29 }
0x10a5   :  { %1955 = vrsqrt.f32 %v1456_v3  ;;  %vm1473_vm11 = vweird.f32 %v1456_v3 }
0x10ab   :  { %v1956_v35 = vpop.eup %1955 }
0x10ac   :  { %v1468_v37 = vmul.f32 %v1956_v35, %v1456_v3  ;;  %vm1474_vm10 = vweird.f32 %v1956_v35 }
0x10ad   :  { %vm1475_vm12 = vmor %vm1473_vm11, %vm1474_vm10 }
0x10ae   :  { %v1469_v40 = vmul.f32 %v1956_v35, %v1468_v37 }
0x10b0   :  { %v1470_v43 = vmul.f32 0.5, %v1469_v40 }
0x10b2   :  { %v1471_v45 = vsub.f32 1.5, %v1470_v43 }
0x10b4   :  { %v1472_v46 = vmul.f32 %v1956_v35, %v1471_v45 }
0x10b6   :  { %v1476_v47 = vsel %vm1475_vm12, %v1956_v35, %v1472_v46 }
0x10b7   :  { %v1478_v48 = vmul.f32 %v1476_v47, %v2541_v42 }
0x10b9   :  { %v1483_v30 = vmul.f32 %v1868_v20, %v1478_v48  ;;  %v1636_v20 = vld [vmem:[%s2675_s16 + $0x8] sm:$0xff] }
0x10bb   :  { %v1488_v50 = vadd.f32 %v1869_v21, %v1483_v30 }
0x10bd   :  { %1781 = vmatmul.msk.f32.gmra.mxu0 %vm70_vm0, %v1488_v50 }
0x110f   :  { %v1522_v54 = vpop.f32.mrf.mxu0 }
0x1110   :  { %v1523_v57 = vadd.f32 %v1870_v53, %v1522_v54 }
0x1112   :  { %v1528_v38 = vmax.f32 %v1523_v57, 0.0 }
0x1114   :  { %1563 = vmatmul.f32.vlgmr.msra.gmra.mxu1 %v1528_v38 }
0x113a   :  { %v1525_v58 = vpop.f32.mrf.mxu0 }
0x113b   :  { %v1526_v59 = vadd.f32 %v1870_v53, %v1525_v58 }
0x113d   :  { %v1529_v60 = vmax.f32 %v1526_v59, 0.0 }
0x113f   :  { %1566 = vmatmul.f32.gmra.mxu1 %v1529_v60 }
0x1191   :  { %v1564_v62 = vpop.f32.mrf.mxu1 }
0x1192   :  { %v1570_v63 = vadd.f32 %v1564_v62, %v2526_v49 }
0x1194   :  { %v1577_v42 = vadd.f32 %v1871_v27, %v1570_v63 }
0x1196   :  { %v1581_v0 = vsel %vm70_vm0, %v1577_v42, 0.0 }
0x1197   :  { %1582 = vadd.xlane.f32.xlu1 %v1581_v0 }
0x11bc   :  { %v1567_v2 = vpop.f32.mrf.mxu1 }
0x11bd   :  { %v1571_v4 = vadd.f32 %v1567_v2, %v2532_v7  ;;  %v1638_v7 = vld [vmem:[%s2675_s16 + $0x18] sm:$0xff] }
0x11be   :  { %1661 = vmatpush.msrb.mxu3 %v1638_v7 }
0x11bf   :  { %v1578_v5 = vadd.f32 %v1871_v27, %v1571_v4 }
0x11c0   :  { %1662 = vmatpush.msrb.mxu3 %v1637_v19 }
0x11c1   :  { %v1584_v8 = vsel %vm70_vm0, %v1578_v5, 0.0 }
0x11c2   :  { %1585 = vadd.xlane.f32.xlu0 %v1584_v8  ;;  %1663 = vmatpush.msrb.mxu3 %v1636_v20 }
0x11c4   :  { %1664 = vmatpush.msrb.mxu3 %v1635_v61 }
0x120a   :  { %v1583_v9 = vpop.xlane.xlu1 %1582 }
0x120b   :  { %v1587_v10 = vmul.f32 %v1583_v9, %v2119_v14 }
0x120d   :  { %v1589_v11 = vsub.f32 %v1577_v42, %v1587_v10 }
0x120f   :  { %v1591_v12 = vmul.f32 %v1589_v11, %v1589_v11 }
0x1211   :  { %v1593_v13 = vsel %vm70_vm0, %v1591_v12, 0.0 }
0x1212   :  { %1594 = vadd.xlane.f32.xlu2 %v1593_v13 }
0x1235   :  { %v1586_v49 = vpop.xlane.xlu0 %1585 }
0x1236   :  { %v1588_v15 = vmul.f32 %v1586_v49, %v2119_v14 }
0x1238   :  { %v1590_v16 = vsub.f32 %v1578_v5, %v1588_v15 }
0x123a   :  { %v1592_v17 = vmul.f32 %v1590_v16, %v1590_v16 }
0x123c   :  { %v1596_v18 = vsel %vm70_vm0, %v1592_v17, 0.0 }
0x123d   :  { %1597 = vadd.xlane.f32.xlu1 %v1596_v18 }
0x1285   :  { %v1595_v36 = vpop.xlane.xlu2 %1594 }
0x1286   :  { %v1599_v21 = vmul.f32 %v1595_v36, %v2119_v14 }
0x1288   :  { %v1601_v22 = vadd.f32 1e-05, %v1599_v21 }
0x128a   :  { %1957 = vrsqrt.f32 %v1601_v22  ;;  %vm1609_vm14 = vweird.f32 %v1601_v22 }
0x1290   :  { %v1958_v23 = vpop.eup %1957 }
0x1291   :  { %v1604_v1 = vmul.f32 %v1958_v23, %v1601_v22  ;;  %vm1610_vm13 = vweird.f32 %v1958_v23 }
0x1292   :  { %vm1611_vm15 = vmor %vm1609_vm14, %vm1610_vm13 }
0x1293   :  { %v1605_v24 = vmul.f32 %v1958_v23, %v1604_v1 }
0x1295   :  { %v1606_v28 = vmul.f32 0.5, %v1605_v24 }
0x1297   :  { %v1607_v55 = vsub.f32 1.5, %v1606_v28 }
0x1299   :  { %v1608_v29 = vmul.f32 %v1958_v23, %v1607_v55 }
0x129b   :  { %v1612_v3 = vsel %vm1611_vm15, %v1958_v23, %v1608_v29 }
0x129c   :  { %v1623_v56 = vmul.f32 %v1612_v3, %v1589_v11 }
0x129e   :  { %v1628_v33 = vmul.f32 %v1872_v31, %v1623_v56 }
0x12a0   :  { %v1633_v34 = vadd.f32 %v1873_v32, %v1628_v33 }
0x12a2   :  { %1799 = vmatmul.msk.f32.vlgmr.msrb.gmra.mxu3 %vm70_vm0, %v1633_v34 }
0x12b0   :  { %v1598_v35 = vpop.xlane.xlu1 %1597 }
0x12b1   :  { %v1600_v6 = vmul.f32 %v1598_v35, %v2119_v14  ;;  %v1874_v14 = vld [vmem:[%s2676_s17] ss:$0 sm:$0xff] }
0x12b3   :  { %v1602_v37 = vadd.f32 1e-05, %v1600_v6 }
0x12b5   :  { %1959 = vrsqrt.f32 %v1602_v37  ;;  %vm1619_vm2 = vweird.f32 %v1602_v37 }
0x12bb   :  { %v1960_v39 = vpop.eup %1959 }
0x12bc   :  { %v1614_v40 = vmul.f32 %v1960_v39, %v1602_v37  ;;  %vm1620_vm1 = vweird.f32 %v1960_v39 }
0x12bd   :  { %vm1621_vm3 = vmor %vm1619_vm2, %vm1620_vm1 }
0x12be   :  { %v1615_v41 = vmul.f32 %v1960_v39, %v1614_v40 }
0x12c0   :  { %v1616_v43 = vmul.f32 0.5, %v1615_v41 }
0x12c2   :  { %v1617_v44 = vsub.f32 1.5, %v1616_v43 }
0x12c4   :  { %v1618_v45 = vmul.f32 %v1960_v39, %v1617_v44 }
0x12c6   :  { %v1622_v25 = vsel %vm1621_vm3, %v1960_v39, %v1618_v45 }
0x12c7   :  { %v1624_v46 = vmul.f32 %v1622_v25, %v1590_v16 }
0x12c9   :  { %v1629_v47 = vmul.f32 %v1872_v31, %v1624_v46 }
0x12cb   :  { %v1634_v48 = vadd.f32 %v1873_v32, %v1629_v47 }
0x12cd   :  { %1800 = vmatmul.msk.f32.gmra.mxu3 %vm70_vm0, %v1634_v48 }
0x1325   :  { %v1666_v30 = vpop.f32.mrf.mxu3 }
0x1326   :  { %v1667_v50 = vadd.f32 %v1874_v14, %v1666_v30 }
0x1328   :  { %1672 = vst [vmem:[#allocation2] sm:$0xff] %v1667_v50 }
0x1350   :  { %v1669_v51 = vpop.f32.mrf.mxu3 }
0x1351   :  { %v1670_v52 = vadd.f32 %v1874_v14, %v1669_v51 }
0x1353   :  { %1673 = vst [vmem:[#allocation2 + $0x8] sm:$0xff] %v1670_v52 }
0x1354   :  { %1686 = dma.vmem_to_hbm [thread:$0]  %s1679_s28, 256, %s1681_s26, [#allocation3], %s2002_s0, %s2002_s0, %s2003_s8  }
0x1355   :  { %1987 = dma.done.wait [#allocation3], 256  }
0x1356   :  { %1988 = vsyncadd [#allocation3], 4294967040 }
0x1357   :  { %1691 = vsyncpa [#allocation3], 1 }

</bundles_post_ra>
